<compile_context>
chip_gen: v6e
topology: v6e:2x2x1
jax: 0.10.0
libtpu: 0.0.40
codegen_flags: <defaults>
</compile_context>

<pallas_src>
import functools

import jax
import jax.numpy as jnp
from jax.experimental import pallas as pl
from jax.experimental.pallas import tpu as pltpu

C_FEAT = 2048         # channels out of the ResNeXt-101 64x4d backbone
POOL_HW = 7           # AvgPool2d((7,7),(1,1)) over a 7x7 map -> global mean
HW = POOL_HW * POOL_HW
NUM_CLASSES = 1000    # nn.Linear(2048, num_classes), default 1000
TK_DEFAULT = 512      # channel (reduction) chunk: overlaps compute under DMA


def _round_up(x, m):
    return ((x + m - 1) // m) * m


def _default_class_tiles():
    """2-way class split only on multi-TensorCore chips (v7x); 1 otherwise."""
    try:
        kind = jax.devices()[0].device_kind.lower()
    except Exception:
        return 1
    return 2 if ("v7" in kind or "tpu7" in kind) else 1


def prepare_head_params(weight, bias, *, pool_positions=HW,
                        param_dtype=jnp.bfloat16):
    """One-time (model-init) preprocessing of the nn.Linear parameters.

    weight: [num_classes, 2048] (PyTorch layout), bias: [num_classes].
    Returns (wt, b) with
      wt: [2048, n_pad] = W.T / pool_positions, zero-padded, cast to param_dtype
      b : [1, n_pad]    f32 bias, zero-padded
    so the kernel computes  sum_spatial(x) @ wt + b == mean_spatial(x) @ W.T + b.
    Padding MUST stay zero so the padded logit columns are exactly zero.
    """
    num_classes, c = weight.shape
    n_pad = _round_up(num_classes, 128)
    wt = jnp.transpose(weight, (1, 0)).astype(jnp.float32) / float(pool_positions)
    wt = jnp.pad(wt, ((0, 0), (0, n_pad - num_classes))).astype(param_dtype)
    b = jnp.pad(bias.astype(jnp.float32), (0, n_pad - num_classes)).reshape(1, n_pad)
    return wt, b


def _head_kernel(x_ref, w_ref, b_ref, o_ref):
    """One (class-tile j, channel-chunk k) step of fused avg-pool + linear.

    x_ref: [B, HW, TK]  NHWC-flattened feature chunk (channels lane-dense)
    w_ref: [TK, TN]     pre-transposed, pre-scaled (1/HW) weight chunk
    b_ref: [1, TN]      bias tile (f32)
    o_ref: [B, TN]      f32 logits; resident accumulator across the k axis
    """
    k = pl.program_id(1)

    # Global average pool: the /HW scale lives in w_ref, so this is a plain
    # sublane-axis sum (cheap; channels stay on the 128-lane axis).
    pooled = jnp.sum(x_ref[...], axis=1)                        # [B, TK] f32

    # Weight-only low precision: upcast the streamed weight chunk, keep the
    # pooled activations and the accumulation in f32.
    partial = jnp.dot(pooled, w_ref[...].astype(jnp.float32),
                      preferred_element_type=jnp.float32)       # [B, TN] f32

    @pl.when(k == 0)
    def _init():
        o_ref[...] = b_ref[...] + partial

    @pl.when(k > 0)
    def _accumulate():
        o_ref[...] = o_ref[...] + partial


@functools.partial(jax.jit, static_argnames=("num_classes", "class_tiles", "tk"))
def resnext101_64x4d_logits(feat_nhwc, wt, b, *, num_classes=NUM_CLASSES,
                            class_tiles=None, tk=TK_DEFAULT):
    """feat_nhwc: [B, 7, 7, 2048] backbone output in the TPU-native NHWC layout.
    wt, b: outputs of prepare_head_params (pre-transposed / padded / scaled).
    returns [B, num_classes] f32 logits.
    """
    B, H, W, C = feat_nhwc.shape
    assert C == C_FEAT and H == POOL_HW and W == POOL_HW
    x = feat_nhwc.reshape(B, HW, C)          # contiguous reshape, channels lane-dense

    c_w, n_pad = wt.shape
    assert c_w == C and b.shape == (1, n_pad)

    # Class-dim tiling: 1 wide tile on single-TC chips, 2 parallel tiles on v7x.
    if class_tiles is None:
        class_tiles = _default_class_tiles()
    if class_tiles < 1 or n_pad % (class_tiles * 128) != 0:
        class_tiles = 1
    tn = n_pad // class_tiles

    # Channel (reduction) chunking so compute overlaps the weight DMA.
    tk = min(tk, C)
    if C % tk != 0:
        tk = C
    nk = C // tk
    grid = (class_tiles, nk)

    w_item = jnp.dtype(wt.dtype).itemsize
    # Right-sized VMEM: double-buffered x & weight blocks + in-kernel f32
    # upcast of one weight chunk + small bias/output blocks + slack.
    vmem_bytes = (2 * B * _round_up(HW, 8) * tk * 4
                  + 2 * tk * tn * w_item
                  + tk * tn * 4
                  + 2 * tn * 4 + 2 * _round_up(B, 8) * tn * 4
                  + (2 << 20))
    vmem_limit = int(min(max(vmem_bytes, 8 << 20), 64 << 20))

    cost = pl.CostEstimate(
        flops=2 * B * C * n_pad + B * C * HW,
        transcendentals=0,
        bytes_accessed=(x.size * 4 * class_tiles + wt.size * w_item
                        + b.size * 4 + B * n_pad * 4),
    )

    out = pl.pallas_call(
        _head_kernel,
        out_shape=jax.ShapeDtypeStruct((B, n_pad), jnp.float32),
        grid=grid,
        in_specs=[
            pl.BlockSpec((B, HW, tk), lambda j, k: (0, 0, k)),   # feature chunk
            pl.BlockSpec((tk, tn), lambda j, k: (k, j)),         # weight chunk
            pl.BlockSpec((1, tn), lambda j, k: (0, j)),          # bias tile
        ],
        out_specs=pl.BlockSpec((B, tn), lambda j, k: (0, j)),    # resident over k
        compiler_params=pltpu.CompilerParams(
            dimension_semantics=("parallel", "arbitrary"),
            vmem_limit_bytes=vmem_limit,
        ),
        cost_estimate=cost,
    )(x, wt, b)

    # Padded columns are exactly zero (zero weight/bias padding); slice them off.
    return out[:, :num_classes]


def resnext101_64x4d_logits_nchw(feat_nchw, wt, b, **kw):
    """PyTorch-layout ([B, 2048, 7, 7]) convenience entry point.

    Only use this if the backbone really emits NCHW; the one-off transpose to
    NHWC costs an extra HBM pass that the NHWC path avoids.
    """
    feat_nhwc = jnp.transpose(feat_nchw, (0, 2, 3, 1))
    return resnext101_64x4d_logits(feat_nhwc, wt, b, **kw)


if __name__ == "__main__":
    key = jax.random.PRNGKey(0)
    k_feat, k_w, k_b = jax.random.split(key, 3)

    B = 2
    # Backbone output of ResNeXt-101 64x4d for a 224x224 image: [B, 2048, 7, 7].
    feat_nchw = jax.random.normal(k_feat, (B, C_FEAT, POOL_HW, POOL_HW), jnp.float32)
    # Deterministic synthetic parameters for nn.Linear(2048, 1000).
    weight = jax.random.normal(k_w, (NUM_CLASSES, C_FEAT), jnp.float32) * 0.02
    bias = jax.random.normal(k_b, (NUM_CLASSES,), jnp.float32) * 0.01

    # Pure-JAX reference: AvgPool2d((7,7),(1,1)) -> flatten -> Linear.
    pooled_ref = jnp.mean(feat_nchw, axis=(2, 3))          # [B, 2048]
    ref = pooled_ref @ weight.T + bias                     # [B, 1000]

    # TPU-native layout for the kernel (a real TPU backbone would emit NHWC).
    feat_nhwc = jnp.transpose(feat_nchw, (0, 2, 3, 1))

    # Default path: bf16 weight streaming, f32 pooled activations / accumulation.
    wt16, b16 = prepare_head_params(weight, bias, param_dtype=jnp.bfloat16)
    logits16 = resnext101_64x4d_logits(feat_nhwc, wt16, b16, num_classes=NUM_CLASSES)
    logits16 = jax.block_until_ready(logits16)
    assert logits16.shape == (B, NUM_CLASSES)
    assert jnp.allclose(logits16, ref, atol=2e-2, rtol=2e-2)

    # Exact f32-weight path.
    wt32, b32 = prepare_head_params(weight, bias, param_dtype=jnp.float32)
    logits32 = resnext101_64x4d_logits(feat_nhwc, wt32, b32, num_classes=NUM_CLASSES)
    logits32 = jax.block_until_ready(logits32)
    assert logits32.shape == (B, NUM_CLASSES)
    assert jnp.allclose(logits32, ref, atol=1e-3, rtol=1e-3)

    # PyTorch-layout convenience wrapper hits the same kernel.
    logits_nchw = resnext101_64x4d_logits_nchw(feat_nchw, wt16, b16,
                                               num_classes=NUM_CLASSES)
    logits_nchw = jax.block_until_ready(logits_nchw)
    assert jnp.allclose(logits_nchw, logits16, atol=1e-5, rtol=1e-5)

    print("KERNEL_OK")
</pallas_src>

<mosaic_0001>
module attributes {stable_mosaic.version = 11 : i64} {
  func.func @_head_kernel(%arg0: i32, %arg1: i32, %arg2: memref<2x49x512xf32, #tpu.memory_space<vmem>>, %arg3: memref<512x1024xbf16, #tpu.memory_space<vmem>>, %arg4: memref<1x1024xf32, #tpu.memory_space<vmem>>, %arg5: memref<2x1024xf32, #tpu.memory_space<vmem>>) attributes {dimension_semantics = [#tpu.dimension_semantics<parallel>, #tpu.dimension_semantics<arbitrary>], iteration_bounds = array<i64: 1, 4>, scalar_prefetch = 0 : i64, scratch_operands = 0 : i64, tpu.core_type = #tpu.core_type<tc>, window_params = [{transform_indices = @transform_0, window_bounds = array<i64: 2, 49, 512>}, {transform_indices = @transform_1, window_bounds = array<i64: 512, 1024>}, {transform_indices = @transform_2, window_bounds = array<i64: 1, 1024>}, {transform_indices = @transform_3, window_bounds = array<i64: 2, 1024>}]} {
    %c0 = arith.constant 0 : index
    %c0_0 = arith.constant 0 : index
    %c0_1 = arith.constant 0 : index
    %0 = vector.load %arg2[%c0, %c0_0, %c0_1] : memref<2x49x512xf32, #tpu.memory_space<vmem>>, vector<2x49x512xf32>
    %cst = arith.constant dense<0.000000e+00> : vector<2x512xf32>
    %1 = vector.multi_reduction <add>, %0, %cst [1] : vector<2x49x512xf32> to vector<2x512xf32>
    %c0_2 = arith.constant 0 : index
    %c0_3 = arith.constant 0 : index
    %2 = vector.load %arg3[%c0_2, %c0_3] : memref<512x1024xbf16, #tpu.memory_space<vmem>>, vector<512x1024xbf16>
    %3 = arith.extf %2 : vector<512x1024xbf16> to vector<512x1024xf32>
    %cst_4 = arith.constant dense<0.000000e+00> : vector<2x1024xf32>
    %4 = tpu.matmul %1, %3, %cst_4 {dimension_numbers = #tpu.dot_dimension_numbers<[1], [0], [0], [1], [0, 0, 1, 1], [], []>} : vector<2x512xf32>, vector<512x1024xf32>, vector<2x1024xf32> -> vector<2x1024xf32>
    %c0_i32 = arith.constant 0 : i32
    %5 = arith.cmpi eq, %arg1, %c0_i32 : i32
    %6 = arith.extui %5 : i1 to i32
    %c0_i32_5 = arith.constant 0 : i32
    %7 = arith.cmpi ne, %6, %c0_i32_5 : i32
    scf.if %7 {
      %c0_8 = arith.constant 0 : index
      %c0_9 = arith.constant 0 : index
      %11 = vector.load %arg4[%c0_8, %c0_9] : memref<1x1024xf32, #tpu.memory_space<vmem>>, vector<1x1024xf32>
      %12 = vector.broadcast %11 : vector<1x1024xf32> to vector<2x1024xf32>
      %13 = arith.addf %12, %4 : vector<2x1024xf32>
      %c0_10 = arith.constant 0 : index
      %c0_11 = arith.constant 0 : index
      %14 = vector.load %arg5[%c0_10, %c0_11] : memref<2x1024xf32, #tpu.memory_space<vmem>>, vector<2x1024xf32>
      tpu.vector_store %arg5[%c0_10, %c0_11], %13 {strides = array<i32>} : memref<2x1024xf32, #tpu.memory_space<vmem>>, vector<2x1024xf32>,
    } else {
    }
    %c0_i32_6 = arith.constant 0 : i32
    %8 = arith.cmpi sgt, %arg1, %c0_i32_6 : i32
    %9 = arith.extui %8 : i1 to i32
    %c0_i32_7 = arith.constant 0 : i32
    %10 = arith.cmpi ne, %9, %c0_i32_7 : i32
    scf.if %10 {
      %c0_8 = arith.constant 0 : index
      %c0_9 = arith.constant 0 : index
      %11 = vector.load %arg5[%c0_8, %c0_9] : memref<2x1024xf32, #tpu.memory_space<vmem>>, vector<2x1024xf32>
      %12 = arith.addf %11, %4 : vector<2x1024xf32>
      %c0_10 = arith.constant 0 : index
      %c0_11 = arith.constant 0 : index
      %13 = vector.load %arg5[%c0_10, %c0_11] : memref<2x1024xf32, #tpu.memory_space<vmem>>, vector<2x1024xf32>
      tpu.vector_store %arg5[%c0_10, %c0_11], %12 {strides = array<i32>} : memref<2x1024xf32, #tpu.memory_space<vmem>>, vector<2x1024xf32>,
    } else {
    }
    return
  }
  func.func @transform_0(%arg0: i32, %arg1: i32) -> (i32, i32, i32) {
    %c0_i32 = arith.constant 0 : i32
    %c0_i32_0 = arith.constant 0 : i32
    %c0_i32_1 = arith.constant 0 : i32
    return %c0_i32, %c0_i32_0, %arg1 : i32, i32, i32
  }
  func.func @transform_1(%arg0: i32, %arg1: i32) -> (i32, i32) {
    %c0_i32 = arith.constant 0 : i32
    return %arg1, %arg0 : i32, i32
  }
  func.func @transform_2(%arg0: i32, %arg1: i32) -> (i32, i32) {
    %c0_i32 = arith.constant 0 : i32
    %c0_i32_0 = arith.constant 0 : i32
    return %c0_i32, %arg0 : i32, i32
  }
  func.func @transform_3(%arg0: i32, %arg1: i32) -> (i32, i32) {
    %c0_i32 = arith.constant 0 : i32
    %c0_i32_0 = arith.constant 0 : i32
    return %c0_i32, %arg0 : i32, i32
  }
}

</mosaic_0001>

<bundles_post_ra>
// kernel: resnext101_64x4d_logits.1
= control target key start
LH: loop header
LB: loop body
LE: loop exit
PB: predicated region body
PF: predicated region fallthrough
CT: control target
= control target key end

     0   :  { %8 = vsyncpa [#allocation4], 0  ;;  %s3361_s0 = inlined_call_operand.vmem [shape: f32[2,49,2048], index: 0, kind: input, shape index: {}]   ;;  %s3362_s1 = inlined_call_operand.hbm [shape: bf16[2048,1024], index: 1, kind: input, shape index: {}]   ;;  %s3363_s2 = inlined_call_operand.hbm [shape: f32[1,1024], index: 2, kind: input, shape index: {}]   ;;  %s3364_s3 = inlined_call_operand.hbm [shape: f32[2,1024], index: 3, kind: output, shape index: {}]  }
   0x1   :  { %10 = vsyncpa [#allocation4 + $0x1], 0 }
   0x2   :  { %11 = vsyncpa [#allocation7], 0 }
   0x3   :  { %12 = vsyncpa [#allocation5], 0  ;;  %s2406_s12 = smov 0   ;;  %s2408_s13 = smov 0  }
   0x4   :  { %s2410_s14 = smov 0   ;;  %s2412_s15 = smov 0  }
   0x5   :  { %s2414_s16 = smov 0   ;;  %s2416_s17 = smov 0  }
   0x6 LB: > { %s2147_s18 = sadd.s32 4294967295, %s2377_s17   ;;  %s27_s19 = sadd.s32 1, %s2373_s16  ;;  %s2377_s17 = sphi %s2416_s17, %s18_s17   ;;  %s2373_s16 = sphi %s2414_s16, %s3414_s16   ;;  %s2369_s15 = sphi %s2412_s15, %s3413_s15   ;;  %s2365_s14 = sphi %s2410_s14, %s3412_s14   ;;  %s2361_s13 = sphi %s2408_s13, %s3411_s13   ;;  %s2357_s12 = sphi %s2406_s12, %s3410_s12  }
   0x7   : > { %p28_p0 = scmp.ge.s32.totalorder %s27_s19, 4  ;;  %s37_s20 = sadd.s32 1, %s2365_s14 }
   0x8   : > { %p44_p1 = scmp.ne.s32.totalorder %s2365_s14, %s2361_s13  ;;  %p45_p2 = scmp.eq.s32.totalorder %s2377_s17, 0 }
   0x9   : > { %s3416_s19 = smov (%p28_p0, %s27_s19), 0  ;;  %p78_p4 = scmp.ne.s32.totalorder %s2361_s13, %s2357_s12 }
   0xa   : > { %p2442_p3 = por %p45_p2, %p44_p1  ;;  %s34_s22 = ssub.s32 %s2373_s16, %s3416_s19 }
   0xb   : > { %p2451_p5 = scmp.eq.s32.totalorder %s2147_s18, 0  ;;  %p35_p6 = scmp.eq.s32.totalorder %s34_s22, 0 }
   0xc   : > { %p2148_p7 = scmp.ge.s32.totalorder %s2377_s17, 1  ;;  %p141_p9 = scmp.lt.s32.totalorder %s2377_s17, 5 }
   0xd   : > { %p2458_p8 = por %p2451_p5, %p78_p4  ;;  %s2379_s27 = smov [#allocation6]  }
   0xe   : > { %s2464_s25 = scalar_select %p35_p6, %s2365_s14, %s37_s20  }
   0xf   : > { %s3368_s24 = scalar_select %p2458_p8, 1, 0 }
  0x10   : > { %p2466_p10 = pnand %p2148_p7, %p141_p9  ;;  %s157_s28 = sshll.u32 %s2379_s27, 4  ;;  %s158_s28 = int_to_ptr.vmem [resolvable:$true] %s157_s28 }
  0x11   : > { %s2254_s29 = scalar_lea.vmem %s158_s28, 128  ;;  %p2262_p4 = scmp.lt.s32.totalorder %s158_s28, %s158_s28 }
  0x12   : > { %p2181_p11 = pneg %p2466_p10  ;;  %p2255_p0 = scmp.ne.s32.totalorder %s158_s28, %s2254_s29 }
  0x13   : > { %p2263_p6 = scmp.lt.s32.totalorder %s2254_s29, %s2254_s29 }
  0x14   : > { %p2182_p12 = pnand %p2181_p11, %p2451_p5 }
  0x15   : > { %p2264_p8 = por %p2263_p6, %p2262_p4 }
  0x16   : > { %p2245_p13 = pneg %p2182_p12 }
  0x18   : > { %p2257_p1 = pnand %p2255_p0, %p2245_p13 }
  0x1a   : > { %p2258_p2 = pneg %p2257_p1 }
  0x1c   : > { %p2265_p7 = pnand %p2264_p8, %p2258_p2 }
  0x1e   : > { %2268 = shalt.err (!%p2265_p7)
}
  0x1f   : > { %2184 = dma.hbm_to_vmem [thread:$0]  (!%p2182_p12), %s3363_s2, 128, %s158_s28, [#allocation7]  }
  0x20   : > { %p2150_p9 = scmp.ge.s32.totalorder %s2377_s17, 4 }
  0x22   : > { %164 = sbr.rel (%p2150_p9) target bundleno = 88 (0x58), region = 20 }
  0x27   : > { %167 = sbr.rel (!%p2442_p3) target bundleno = 72 (0x48), region = 24  ;;  %s169_s5 = sand.u32 (%p2442_p3), 1, %s2365_s14  }
  0x28   : > { %s2166_s6 = sshll.u32 (%p2442_p3), %s2373_s16, 5  ;;  %s2169_s7 = smul.u32 (%p2442_p3), 448, %s169_s5 }
  0x29   : > { %s2485_s10 = scalar_lea.vmem (%p2442_p3), %s3361_s0, %s2166_s6 }
  0x2a   : > { %v187_v0 = vld [vmem:[%s2485_s10] sm:$0xff] (%p2442_p3)  ;;  %v189_v1 = vld [vmem:[%s2485_s10 + $0x8] sm:$0xff] (%p2442_p3)  ;;  %v191_v2 = vld [vmem:[%s2485_s10 + $0x10] sm:$0xff] (%p2442_p3)  ;;  %s2493_s11 = scalar_lea.vmem (%p2442_p3), [#allocation2], %s2169_s7 }
  0x2b   : > { %v193_v3 = vld [vmem:[%s2485_s10 + $0x18] sm:$0xff] (%p2442_p3)  ;;  %v195_v4 = vld [vmem:[%s2485_s10 + $0x80] sm:$0xff] (%p2442_p3)  ;;  %v197_v5 = vld [vmem:[%s2485_s10 + $0x88] sm:$0xff] (%p2442_p3)  ;;  %188 = vst [vmem:[%s2493_s11] sm:$0xff] (%p2442_p3), %v187_v0 }
  0x2c   : > { %190 = vst [vmem:[%s2493_s11 + $0x8] sm:$0xff] %v189_v1  ;;  %192 = vst [vmem:[%s2493_s11 + $0x10] sm:$0xff] %v191_v2  ;;  %v199_v6 = vld [vmem:[%s2485_s10 + $0x90] sm:$0xff]  ;;  %v201_v7 = vld [vmem:[%s2485_s10 + $0x98] sm:$0xff] }
  0x2d   : > { %194 = vst [vmem:[%s2493_s11 + $0x18] sm:$0xff] %v193_v3  ;;  %196 = vst [vmem:[%s2493_s11 + $0x20] sm:$0xff] %v195_v4  ;;  %v203_v8 = vld [vmem:[%s2485_s10 + $0x100] sm:$0xff]  ;;  %v205_v9 = vld [vmem:[%s2485_s10 + $0x108] sm:$0xff] }
  0x2e   : > { %198 = vst [vmem:[%s2493_s11 + $0x28] sm:$0xff] %v197_v5  ;;  %200 = vst [vmem:[%s2493_s11 + $0x30] sm:$0xff] %v199_v6  ;;  %v207_v10 = vld [vmem:[%s2485_s10 + $0x110] sm:$0xff]  ;;  %v209_v11 = vld [vmem:[%s2485_s10 + $0x118] sm:$0xff] }
  0x2f   : > { %202 = vst [vmem:[%s2493_s11 + $0x38] sm:$0xff] %v201_v7  ;;  %204 = vst [vmem:[%s2493_s11 + $0x40] sm:$0xff] %v203_v8  ;;  %v211_v12 = vld [vmem:[%s2485_s10 + $0x180] sm:$0xff]  ;;  %v213_v13 = vld [vmem:[%s2485_s10 + $0x188] sm:$0xff] }
  0x30   : > { %206 = vst [vmem:[%s2493_s11 + $0x48] sm:$0xff] %v205_v9  ;;  %208 = vst [vmem:[%s2493_s11 + $0x50] sm:$0xff] %v207_v10  ;;  %v215_v14 = vld [vmem:[%s2485_s10 + $0x190] sm:$0xff]  ;;  %v217_v15 = vld [vmem:[%s2485_s10 + $0x198] sm:$0xff] }
  0x31   : > { %210 = vst [vmem:[%s2493_s11 + $0x58] sm:$0xff] %v209_v11  ;;  %212 = vst [vmem:[%s2493_s11 + $0x60] sm:$0xff] %v211_v12  ;;  %v219_v16 = vld [vmem:[%s2485_s10 + $0x200] sm:$0xff]  ;;  %v221_v17 = vld [vmem:[%s2485_s10 + $0x208] sm:$0xff] }
  0x32   : > { %214 = vst [vmem:[%s2493_s11 + $0x68] sm:$0xff] %v213_v13  ;;  %216 = vst [vmem:[%s2493_s11 + $0x70] sm:$0xff] %v215_v14  ;;  %v223_v18 = vld [vmem:[%s2485_s10 + $0x210] sm:$0xff]  ;;  %v225_v19 = vld [vmem:[%s2485_s10 + $0x218] sm:$0xff] }
  0x33   : > { %218 = vst [vmem:[%s2493_s11 + $0x78] sm:$0xff] %v217_v15  ;;  %220 = vst [vmem:[%s2493_s11 + $0x80] sm:$0xff] %v219_v16  ;;  %v227_v20 = vld [vmem:[%s2485_s10 + $0x280] sm:$0xff]  ;;  %v229_v21 = vld [vmem:[%s2485_s10 + $0x288] sm:$0xff] }
  0x34   : > { %222 = vst [vmem:[%s2493_s11 + $0x88] sm:$0xff] %v221_v17  ;;  %224 = vst [vmem:[%s2493_s11 + $0x90] sm:$0xff] %v223_v18  ;;  %v231_v22 = vld [vmem:[%s2485_s10 + $0x290] sm:$0xff]  ;;  %v233_v23 = vld [vmem:[%s2485_s10 + $0x298] sm:$0xff] }
  0x35   : > { %226 = vst [vmem:[%s2493_s11 + $0x98] sm:$0xff] %v225_v19  ;;  %228 = vst [vmem:[%s2493_s11 + $0xa0] sm:$0xff] %v227_v20  ;;  %v235_v24 = vld [vmem:[%s2485_s10 + $0x300] sm:$0xff]  ;;  %v237_v25 = vld [vmem:[%s2485_s10 + $0x308] sm:$0xff] }
  0x36   : > { %230 = vst [vmem:[%s2493_s11 + $0xa8] sm:$0xff] %v229_v21  ;;  %232 = vst [vmem:[%s2493_s11 + $0xb0] sm:$0xff] %v231_v22  ;;  %v239_v26 = vld [vmem:[%s2485_s10 + $0x310] sm:$0xff]  ;;  %v241_v27 = vld [vmem:[%s2485_s10 + $0x318] sm:$0xff] }
  0x37   : > { %234 = vst [vmem:[%s2493_s11 + $0xb8] sm:$0xff] %v233_v23  ;;  %236 = vst [vmem:[%s2493_s11 + $0xc0] sm:$0xff] %v235_v24  ;;  %v243_v28 = vld [vmem:[%s2485_s10 + $0x380] sm:$0xff]  ;;  %v245_v29 = vld [vmem:[%s2485_s10 + $0x388] sm:$0xff] }
  0x38   : > { %238 = vst [vmem:[%s2493_s11 + $0xc8] sm:$0xff] %v237_v25  ;;  %240 = vst [vmem:[%s2493_s11 + $0xd0] sm:$0xff] %v239_v26  ;;  %v247_v30 = vld [vmem:[%s2485_s10 + $0x390] sm:$0xff]  ;;  %v249_v31 = vld [vmem:[%s2485_s10 + $0x398] sm:$0xff] }
  0x39   : > { %242 = vst [vmem:[%s2493_s11 + $0xd8] sm:$0xff] %v241_v27  ;;  %244 = vst [vmem:[%s2493_s11 + $0xe0] sm:$0xff] %v243_v28  ;;  %v251_v32 = vld [vmem:[%s2485_s10 + $0x400] sm:$0xff]  ;;  %v253_v33 = vld [vmem:[%s2485_s10 + $0x408] sm:$0xff] }
  0x3a   : > { %246 = vst [vmem:[%s2493_s11 + $0xe8] sm:$0xff] %v245_v29  ;;  %248 = vst [vmem:[%s2493_s11 + $0xf0] sm:$0xff] %v247_v30  ;;  %v255_v34 = vld [vmem:[%s2485_s10 + $0x410] sm:$0xff]  ;;  %v257_v35 = vld [vmem:[%s2485_s10 + $0x418] sm:$0xff] }
  0x3b   : > { %250 = vst [vmem:[%s2493_s11 + $0xf8] sm:$0xff] %v249_v31  ;;  %252 = vst [vmem:[%s2493_s11 + $0x100] sm:$0xff] %v251_v32  ;;  %v259_v36 = vld [vmem:[%s2485_s10 + $0x480] sm:$0xff]  ;;  %v261_v37 = vld [vmem:[%s2485_s10 + $0x488] sm:$0xff] }
  0x3c   : > { %254 = vst [vmem:[%s2493_s11 + $0x108] sm:$0xff] %v253_v33  ;;  %256 = vst [vmem:[%s2493_s11 + $0x110] sm:$0xff] %v255_v34  ;;  %v263_v38 = vld [vmem:[%s2485_s10 + $0x490] sm:$0xff]  ;;  %v265_v39 = vld [vmem:[%s2485_s10 + $0x498] sm:$0xff] }
  0x3d   : > { %258 = vst [vmem:[%s2493_s11 + $0x118] sm:$0xff] %v257_v35  ;;  %260 = vst [vmem:[%s2493_s11 + $0x120] sm:$0xff] %v259_v36  ;;  %v267_v40 = vld [vmem:[%s2485_s10 + $0x500] sm:$0xff]  ;;  %v269_v41 = vld [vmem:[%s2485_s10 + $0x508] sm:$0xff] }
  0x3e   : > { %262 = vst [vmem:[%s2493_s11 + $0x128] sm:$0xff] %v261_v37  ;;  %264 = vst [vmem:[%s2493_s11 + $0x130] sm:$0xff] %v263_v38  ;;  %v271_v42 = vld [vmem:[%s2485_s10 + $0x510] sm:$0xff]  ;;  %v273_v43 = vld [vmem:[%s2485_s10 + $0x518] sm:$0xff] }
  0x3f   : > { %266 = vst [vmem:[%s2493_s11 + $0x138] sm:$0xff] %v265_v39  ;;  %268 = vst [vmem:[%s2493_s11 + $0x140] sm:$0xff] %v267_v40  ;;  %v275_v44 = vld [vmem:[%s2485_s10 + $0x580] sm:$0xff]  ;;  %v277_v45 = vld [vmem:[%s2485_s10 + $0x588] sm:$0xff] }
  0x40   : > { %270 = vst [vmem:[%s2493_s11 + $0x148] sm:$0xff] %v269_v41  ;;  %272 = vst [vmem:[%s2493_s11 + $0x150] sm:$0xff] %v271_v42  ;;  %v279_v46 = vld [vmem:[%s2485_s10 + $0x590] sm:$0xff]  ;;  %v281_v47 = vld [vmem:[%s2485_s10 + $0x598] sm:$0xff] }
  0x41   : > { %274 = vst [vmem:[%s2493_s11 + $0x158] sm:$0xff] %v273_v43  ;;  %276 = vst [vmem:[%s2493_s11 + $0x160] sm:$0xff] %v275_v44  ;;  %v283_v48 = vld [vmem:[%s2485_s10 + $0x600] sm:$0xff]  ;;  %v285_v49 = vld [vmem:[%s2485_s10 + $0x608] sm:$0xff] }
  0x42   : > { %278 = vst [vmem:[%s2493_s11 + $0x168] sm:$0xff] %v277_v45  ;;  %280 = vst [vmem:[%s2493_s11 + $0x170] sm:$0xff] %v279_v46  ;;  %v287_v50 = vld [vmem:[%s2485_s10 + $0x610] sm:$0xff]  ;;  %v289_v51 = vld [vmem:[%s2485_s10 + $0x618] sm:$0xff] }
  0x43   : > { %282 = vst [vmem:[%s2493_s11 + $0x178] sm:$0xff] %v281_v47  ;;  %284 = vst [vmem:[%s2493_s11 + $0x180] sm:$0xff] %v283_v48  ;;  %v291_v52 = vld [vmem:[%s2485_s10 + $0x680] sm:$0xff]  ;;  %v293_v53 = vld [vmem:[%s2485_s10 + $0x688] sm:$0xff] }
  0x44   : > { %286 = vst [vmem:[%s2493_s11 + $0x188] sm:$0xff] %v285_v49  ;;  %288 = vst [vmem:[%s2493_s11 + $0x190] sm:$0xff] %v287_v50  ;;  %v295_v54 = vld [vmem:[%s2485_s10 + $0x690] sm:$0xff]  ;;  %v297_v55 = vld [vmem:[%s2485_s10 + $0x698] sm:$0xff] }
  0x45   : > { %290 = vst [vmem:[%s2493_s11 + $0x198] sm:$0xff] %v289_v51  ;;  %292 = vst [vmem:[%s2493_s11 + $0x1a0] sm:$0xff] %v291_v52 }
  0x46   : > { %294 = vst [vmem:[%s2493_s11 + $0x1a8] sm:$0xff] %v293_v53  ;;  %296 = vst [vmem:[%s2493_s11 + $0x1b0] sm:$0xff] %v295_v54 }
  0x47   : > { %298 = vst [vmem:[%s2493_s11 + $0x1b8] sm:$0xff] %v297_v55 }
  0x48 PF: > { %s305_s12 = sand.u32 1, %s2365_s14   ;;  %s2168_s20 = sshll.u32 %s2373_s16, 15 }
  0x49   : > { %s2153_s22 = sshll.u32 %s305_s12, 11  ;;  %s318_s29 = scalar_lea.hbm %s3362_s1, %s2168_s20 }
  0x4a   : > { %s309_s30 = scalar_lea.vmem [#allocation3], %s2153_s22  ;;  %s306_s5 = scalar_lea.sflag [#allocation4], %s305_s12 }
  0x4b   : > { %s319_s4 = sshll.u32 %s309_s30, 4  ;;  %s2380_s7 = smov [#allocation3]   ;;  %s320_s4 = int_to_ptr.vmem [resolvable:$true] %s319_s4 }
  0x4c   : > { %s2281_s6 = scalar_lea.vmem %s320_s4, 32768  ;;  %s2285_s8 = sshll.u32 %s2380_s7, 4  ;;  %s2286_s8 = int_to_ptr.vmem [resolvable:$false] %s2285_s8 }
  0x4d   : > { %p2282_p8 = scmp.ne.s32.totalorder %s320_s4, %s2281_s6  ;;  %s2287_s9 = scalar_lea.vmem %s2286_s8, 65536 }
  0x4e   : > { %p2288_p13 = scmp.lt.s32.totalorder %s320_s4, %s2286_s8  ;;  %p2289_p0 = scmp.lt.s32.totalorder %s2287_s9, %s2281_s6 }
  0x4f   : > { %p2283_p11 = pnand %p2282_p8, %p2442_p3 }
  0x50   : > { %p2290_p1 = por %p2289_p0, %p2288_p13 }
  0x51   : > { %p2284_p12 = pneg %p2283_p11 }
  0x53   : > { %p2291_p2 = pnand %p2290_p1, %p2284_p12 }
  0x55   : > { %2294 = shalt.err (!%p2291_p2)
}
  0x56   : > { %s2381_s10 = smov 512   ;;  %s2382_s11 = smov 32  }
  0x57   : > { %2173 = dma.hbm_to_vmem [thread:$0]  (%p2442_p3), %s318_s29, 32768, %s320_s4, %s306_s5, %s2381_s10, %s2381_s10, %s2382_s11  }
  0x58 PF: > { %331 = sbr.rel (%p2466_p10) target bundleno = 647 (0x287), region = 51  ;;  %s334_s12 = sand.u32 (!%p2466_p10), 1, %s2361_s13  }
  0x59   : > { %s2170_s20 = smul.u32 (!%p2466_p10), 448, %s334_s12  ;;  %s2158_s22 = sshll.u32 (!%p2466_p10), %s334_s12, 11 }
  0x5a   : > { %s341_s28 = scalar_lea.sflag (!%p2466_p10), [#allocation4], %s334_s12  ;;  %s2615_s30 = scalar_lea.vmem (!%p2466_p10), [#allocation3], %s2158_s22 }
  0x5b   : > { %s2613_s27 = scalar_lea.vmem (!%p2466_p10), [#allocation2], %s2170_s20  ;;  %p3370_p4 = scmp.ne.s32.totalorder (!%p2466_p10), %s3368_s24, 0 }
  0x5d   : > { %2344 = dma.done.wait (%p3370_p4), %s341_s28, 32768  }
  0x5e   : > { %2346 = vsyncadd (%p3370_p4), %s341_s28, 4294934528 }
  0x5f   : > { %2348 = dma.done.wait (%p2451_p5), [#allocation7], 128  }
  0x60   : > { %2350 = vsyncadd (%p2451_p5), [#allocation7], 4294967168  ;;  %v596_v56 = vld [vmem:[%s2615_s30 + $0x1e0] sm:$0xff]  ;;  %vm436_vm0 = vcmask 1040384   ;;  %vm1312_vm1 = vcmask 1041409   ;;  %p2160_p3 = scmp.ne.s32.totalorder %s2369_s15, 0 }
  0x61   : > { %v724_v57 = vld [vmem:[%s2615_s30 + $0x5e0] sm:$0xff]  ;;  %v913_v59 = vunpack.c.h.bf16 %v596_v56  ;;  %v912_v61 = vunpack.c.l.bf16 %v596_v56 }
  0x62   : > { %v592_v58 = vld [vmem:[%s2615_s30 + $0x1c0] sm:$0xff]  ;;  %v1169_v60 = vunpack.c.h.bf16 %v724_v57  ;;  %v1168_v62 = vunpack.c.l.bf16 %v724_v57 }
  0x63   : > { %v720_v63 = vld [vmem:[%s2615_s30 + $0x5c0] sm:$0xff]  ;;  %v905_v2 = vunpack.c.h.bf16 %v592_v58  ;;  %v904_v4 = vunpack.c.l.bf16 %v592_v58  ;;  %1321 = vmatprep.subr.mxu0 %v913_v59 }
  0x64   : > { %v588_v0 = vld [vmem:[%s2615_s30 + $0x1a0] sm:$0xff]  ;;  %v1161_v3 = vunpack.c.h.bf16 %v720_v63  ;;  %v1160_v5 = vunpack.c.l.bf16 %v720_v63  ;;  %1392 = vmatprep.subr.mxu1 %v1169_v60  ;;  %1322 = vmatpush1.msra.mxu0 %v912_v61 }
  0x65   : > { %v716_v1 = vld [vmem:[%s2615_s30 + $0x5a0] sm:$0xff]  ;;  %v897_v8 = vunpack.c.h.bf16 %v588_v0  ;;  %1393 = vmatpush1.msra.mxu1 %v1168_v62  ;;  %v896_v10 = vunpack.c.l.bf16 %v588_v0  ;;  %1323 = vmatprep.subr.mxu0 %v905_v2 }
  0x66   : > { %v584_v6 = vld [vmem:[%s2615_s30 + $0x180] sm:$0xff]  ;;  %v1153_v9 = vunpack.c.h.bf16 %v716_v1  ;;  %v1152_v11 = vunpack.c.l.bf16 %v716_v1  ;;  %1394 = vmatprep.subr.mxu1 %v1161_v3  ;;  %1324 = vmatpush1.msra.mxu0 %v904_v4 }
  0x67   : > { %v712_v7 = vld [vmem:[%s2615_s30 + $0x580] sm:$0xff]  ;;  %v889_v14 = vunpack.c.h.bf16 %v584_v6  ;;  %1395 = vmatpush1.msra.mxu1 %v1160_v5  ;;  %v888_v16 = vunpack.c.l.bf16 %v584_v6  ;;  %1325 = vmatprep.subr.mxu0 %v897_v8 }
  0x68   : > { %v580_v12 = vld [vmem:[%s2615_s30 + $0x160] sm:$0xff]  ;;  %v1145_v15 = vunpack.c.h.bf16 %v712_v7  ;;  %v1144_v17 = vunpack.c.l.bf16 %v712_v7  ;;  %1396 = vmatprep.subr.mxu1 %v1153_v9  ;;  %1326 = vmatpush1.msra.mxu0 %v896_v10 }
  0x69   : > { %v708_v13 = vld [vmem:[%s2615_s30 + $0x560] sm:$0xff]  ;;  %v881_v20 = vunpack.c.h.bf16 %v580_v12  ;;  %1397 = vmatpush1.msra.mxu1 %v1152_v11  ;;  %v880_v22 = vunpack.c.l.bf16 %v580_v12  ;;  %1327 = vmatprep.subr.mxu0 %v889_v14 }
  0x6a   : > { %v576_v18 = vld [vmem:[%s2615_s30 + $0x140] sm:$0xff]  ;;  %v1137_v21 = vunpack.c.h.bf16 %v708_v13  ;;  %v1136_v23 = vunpack.c.l.bf16 %v708_v13  ;;  %1398 = vmatprep.subr.mxu1 %v1145_v15  ;;  %1328 = vmatpush1.msra.mxu0 %v888_v16 }
  0x6b   : > { %v704_v19 = vld [vmem:[%s2615_s30 + $0x540] sm:$0xff]  ;;  %v873_v26 = vunpack.c.h.bf16 %v576_v18  ;;  %1399 = vmatpush1.msra.mxu1 %v1144_v17  ;;  %v872_v28 = vunpack.c.l.bf16 %v576_v18  ;;  %1329 = vmatprep.subr.mxu0 %v881_v20 }
  0x6c   : > { %v572_v24 = vld [vmem:[%s2615_s30 + $0x120] sm:$0xff]  ;;  %v1129_v27 = vunpack.c.h.bf16 %v704_v19  ;;  %v1128_v29 = vunpack.c.l.bf16 %v704_v19  ;;  %1400 = vmatprep.subr.mxu1 %v1137_v21  ;;  %1330 = vmatpush1.msra.mxu0 %v880_v22 }
  0x6d   : > { %v700_v25 = vld [vmem:[%s2615_s30 + $0x520] sm:$0xff]  ;;  %v865_v32 = vunpack.c.h.bf16 %v572_v24  ;;  %1401 = vmatpush1.msra.mxu1 %v1136_v23  ;;  %v864_v36 = vunpack.c.l.bf16 %v572_v24  ;;  %1331 = vmatprep.subr.mxu0 %v873_v26 }
  0x6e   : > { %v568_v30 = vld [vmem:[%s2615_s30 + $0x100] sm:$0xff]  ;;  %v1121_v33 = vunpack.c.h.bf16 %v700_v25  ;;  %v1120_v37 = vunpack.c.l.bf16 %v700_v25  ;;  %1402 = vmatprep.subr.mxu1 %v1129_v27  ;;  %1332 = vmatpush1.msra.mxu0 %v872_v28 }
  0x6f   : > { %v696_v31 = vld [vmem:[%s2615_s30 + $0x500] sm:$0xff]  ;;  %v857_v40 = vunpack.c.h.bf16 %v568_v30  ;;  %v856_v42 = vunpack.c.l.bf16 %v568_v30  ;;  %1403 = vmatpush1.msra.mxu1 %v1128_v29  ;;  %1333 = vmatprep.subr.mxu0 %v865_v32 }
  0x70   : > { %v2642_v34 = vld [vmem:[%s2615_s30 + $0xe0] sm:$0xff]  ;;  %v1113_v41 = vunpack.c.h.bf16 %v696_v31  ;;  %v1112_v43 = vunpack.c.l.bf16 %v696_v31  ;;  %1404 = vmatprep.subr.mxu1 %v1121_v33  ;;  %1334 = vmatpush1.msra.mxu0 %v864_v36 }
  0x71   : > { %v2645_v35 = vld [vmem:[%s2615_s30 + $0x4e0] sm:$0xff]  ;;  %v849_v46 = vunpack.c.h.bf16 %v2642_v34  ;;  %v848_v48 = vunpack.c.l.bf16 %v2642_v34  ;;  %1405 = vmatpush1.msra.mxu1 %v1120_v37  ;;  %1335 = vmatprep.subr.mxu0 %v857_v40 }
  0x72   : > { %v2648_v38 = vld [vmem:[%s2615_s30 + $0xc0] sm:$0xff]  ;;  %v1105_v47 = vunpack.c.h.bf16 %v2645_v35  ;;  %v1104_v49 = vunpack.c.l.bf16 %v2645_v35  ;;  %1406 = vmatprep.subr.mxu1 %v1113_v41  ;;  %1336 = vmatpush1.msra.mxu0 %v856_v42 }
  0x73   : > { %v2651_v39 = vld [vmem:[%s2615_s30 + $0x4c0] sm:$0xff]  ;;  %v841_v52 = vunpack.c.h.bf16 %v2648_v38  ;;  %v840_v54 = vunpack.c.l.bf16 %v2648_v38  ;;  %1407 = vmatpush1.msra.mxu1 %v1112_v43  ;;  %1337 = vmatprep.subr.mxu0 %v849_v46 }
  0x74   : > { %v2654_v44 = vld [vmem:[%s2615_s30 + $0xa0] sm:$0xff]  ;;  %v1097_v53 = vunpack.c.h.bf16 %v2651_v39  ;;  %v1096_v55 = vunpack.c.l.bf16 %v2651_v39  ;;  %1408 = vmatprep.subr.mxu1 %v1105_v47  ;;  %1338 = vmatpush1.msra.mxu0 %v848_v48 }
  0x75   : > { %v2657_v45 = vld [vmem:[%s2615_s30 + $0x4a0] sm:$0xff]  ;;  %v833_v58 = vunpack.c.h.bf16 %v2654_v44  ;;  %v832_v60 = vunpack.c.l.bf16 %v2654_v44  ;;  %1409 = vmatpush1.msra.mxu1 %v1104_v49  ;;  %1339 = vmatprep.subr.mxu0 %v841_v52  ;;  %v382_v52 = vld [vmem:[%s2613_s27 + $0x38] sm:$0xff] }
  0x76   : > { %v2664_v50 = vld [vmem:[%s2615_s30 + $0x80] sm:$0xff]  ;;  %v1089_v59 = vunpack.c.h.bf16 %v2657_v45  ;;  %v1088_v61 = vunpack.c.l.bf16 %v2657_v45  ;;  %1410 = vmatprep.subr.mxu1 %v1097_v53  ;;  %1340 = vmatpush1.msra.mxu0 %v840_v54  ;;  %v410_v49 = vld [vmem:[%s2613_s27 + $0x118] sm:$0xff] }
  0x77   : > { %v2667_v51 = vld [vmem:[%s2615_s30 + $0x480] sm:$0xff]  ;;  %v825_v0 = vunpack.c.h.bf16 %v2664_v50  ;;  %v824_v2 = vunpack.c.l.bf16 %v2664_v50  ;;  %1411 = vmatpush1.msra.mxu1 %v1096_v55  ;;  %1341 = vmatprep.subr.mxu0 %v833_v58 }
  0x78   : > { %v2674_v56 = vld [vmem:[%s2615_s30 + $0x60] sm:$0xff]  ;;  %v1081_v1 = vunpack.c.h.bf16 %v2667_v51  ;;  %v1080_v3 = vunpack.c.l.bf16 %v2667_v51  ;;  %1412 = vmatprep.subr.mxu1 %v1089_v59  ;;  %1342 = vmatpush1.msra.mxu0 %v832_v60 }
  0x79   : > { %v2677_v57 = vld [vmem:[%s2615_s30 + $0x460] sm:$0xff]  ;;  %v817_v6 = vunpack.c.h.bf16 %v2674_v56  ;;  %v816_v8 = vunpack.c.l.bf16 %v2674_v56  ;;  %1413 = vmatpush1.msra.mxu1 %v1088_v61  ;;  %1343 = vmatprep.subr.mxu0 %v825_v0  ;;  %v376_v0 = vld [vmem:[%s2613_s27 + $0x8] sm:$0xff] }
  0x7a   : > { %v2684_v62 = vld [vmem:[%s2615_s30 + $0x40] sm:$0xff]  ;;  %v1073_v7 = vunpack.c.h.bf16 %v2677_v57  ;;  %v1072_v9 = vunpack.c.l.bf16 %v2677_v57  ;;  %1414 = vmatprep.subr.mxu1 %v1081_v1  ;;  %1344 = vmatpush1.msra.mxu0 %v824_v2  ;;  %v378_v57 = vld [vmem:[%s2613_s27 + $0x18] sm:$0xff] }
  0x7b   : > { %v2687_v63 = vld [vmem:[%s2615_s30 + $0x440] sm:$0xff]  ;;  %v809_v12 = vunpack.c.h.bf16 %v2684_v62  ;;  %v808_v14 = vunpack.c.l.bf16 %v2684_v62  ;;  %1415 = vmatpush1.msra.mxu1 %v1080_v3  ;;  %1345 = vmatprep.subr.mxu0 %v817_v6  ;;  %v384_v6 = vld [vmem:[%s2613_s27 + $0x48] sm:$0xff]  ;;  %v386_v3 = vld [vmem:[%s2613_s27 + $0x58] sm:$0xff] }
  0x7c   : > { %v2694_v4 = vld [vmem:[%s2615_s30 + $0x20] sm:$0xff]  ;;  %v1065_v13 = vunpack.c.h.bf16 %v2687_v63  ;;  %v1064_v15 = vunpack.c.l.bf16 %v2687_v63  ;;  %1416 = vmatprep.subr.mxu1 %v1073_v7  ;;  %1346 = vmatpush1.msra.mxu0 %v816_v8  ;;  %v380_v7 = vld [vmem:[%s2613_s27 + $0x28] sm:$0xff] }
  0x7d   : > { %v2697_v5 = vld [vmem:[%s2615_s30 + $0x420] sm:$0xff]  ;;  %v801_v18 = vunpack.c.h.bf16 %v2694_v4  ;;  %v800_v20 = vunpack.c.l.bf16 %v2694_v4  ;;  %1417 = vmatpush1.msra.mxu1 %v1072_v9  ;;  %1347 = vmatprep.subr.mxu0 %v809_v12  ;;  %v404_v62 = vld [vmem:[%s2613_s27 + $0xe8] sm:$0xff]  ;;  %v445_v48 = vadd.f32 %v380_v7, %v376_v0 }
  0x7e   : > { %v2704_v10 = vld [vmem:[%s2615_s30] sm:$0xff]  ;;  %v1057_v19 = vunpack.c.h.bf16 %v2697_v5  ;;  %v1056_v21 = vunpack.c.l.bf16 %v2697_v5  ;;  %1418 = vmatprep.subr.mxu1 %v1065_v13  ;;  %1348 = vmatpush1.msra.mxu0 %v808_v14  ;;  %v408_v14 = vld [vmem:[%s2613_s27 + $0x108] sm:$0xff] }
  0x7f   : > { %v2707_v11 = vld [vmem:[%s2615_s30 + $0x400] sm:$0xff]  ;;  %v793_v24 = vunpack.c.h.bf16 %v2704_v10  ;;  %v792_v26 = vunpack.c.l.bf16 %v2704_v10  ;;  %1419 = vmatpush1.msra.mxu1 %v1064_v15  ;;  %1349 = vmatprep.subr.mxu0 %v801_v18  ;;  %v388_v12 = vld [vmem:[%s2613_s27 + $0x68] sm:$0xff]  ;;  %v406_v18 = vld [vmem:[%s2613_s27 + $0xf8] sm:$0xff]  ;;  %v497_v7 = vadd.f32 %v408_v14, %v404_v62 }
  0x80   : > { %v2714_v16 = vld [vmem:[%s2615_s30 + $0x3e0] sm:$0xff]  ;;  %v1049_v25 = vunpack.c.h.bf16 %v2707_v11  ;;  %v1048_v27 = vunpack.c.l.bf16 %v2707_v11  ;;  %1420 = vmatprep.subr.mxu1 %v1057_v19  ;;  %1350 = vmatpush1.msra.mxu0 %v800_v20  ;;  %v400_v15 = vld [vmem:[%s2613_s27 + $0xc8] sm:$0x1]  ;;  %v414_v19 = vld [vmem:[%s2613_s27 + $0x138] sm:$0xff]  ;;  %v446_v20 = vadd.f32 %v445_v48, %v384_v6  ;;  %v523_v5 = vadd.f32 %v410_v49, %v406_v18 }
  0x81   : > { %v2717_v17 = vld [vmem:[%s2615_s30 + $0x7e0] sm:$0xff]  ;;  %v1041_v30 = vunpack.c.h.bf16 %v2714_v16  ;;  %v1040_v32 = vunpack.c.l.bf16 %v2714_v16  ;;  %1421 = vmatpush1.msra.mxu1 %v1056_v21  ;;  %v412_v63 = vld [vmem:[%s2613_s27 + $0x128] sm:$0xff]  ;;  %1351 = vmatprep.subr.mxu0 %v793_v24  ;;  %v471_v21 = vadd.f32 %v382_v52, %v378_v57  ;;  %v390_v49 = vld [vmem:[%s2613_s27 + $0x78] sm:$0xff]  ;;  %v450_v16 = vsel %vm436_vm0, %v400_v15, 0.0 }
  0x82   : > { %v2724_v22 = vld [vmem:[%s2615_s30 + $0x3c0] sm:$0xff]  ;;  %v1297_v31 = vunpack.c.h.bf16 %v2717_v17  ;;  %v1296_v33 = vunpack.c.l.bf16 %v2717_v17  ;;  %1422 = vmatprep.subr.mxu1 %v1049_v25  ;;  %v392_v9 = vld [vmem:[%s2613_s27 + $0x88] sm:$0xff]  ;;  %1352 = vmatpush1.msra.mxu0 %v792_v26  ;;  %v498_v48 = vadd.f32 %v497_v7, %v412_v63  ;;  %v418_v52 = vld [vmem:[%s2613_s27 + $0x158] sm:$0xff]  ;;  %v447_v57 = vadd.f32 %v446_v20, %v388_v12 }
  0x83   : > { %v2727_v23 = vld [vmem:[%s2615_s30 + $0x7c0] sm:$0xff]  ;;  %v1033_v36 = vunpack.c.h.bf16 %v2724_v22  ;;  %v1032_v38 = vunpack.c.l.bf16 %v2724_v22  ;;  %v416_v0 = vld [vmem:[%s2613_s27 + $0x148] sm:$0xff]  ;;  %1423 = vmatpush1.msra.mxu1 %v1048_v27  ;;  %1353 = vmatprep.subr.mxu0 %v1041_v30  ;;  %v402_v18 = vld [vmem:[%s2613_s27 + $0xd8] sm:$0x1]  ;;  %v472_v11 = vadd.f32 %v471_v21, %v386_v3  ;;  %v524_v10 = vadd.f32 %v523_v5, %v414_v19 }
  0x84   : > { %v2734_v28 = vld [vmem:[%s2615_s30 + $0x3a0] sm:$0xff]  ;;  %v1289_v37 = vunpack.c.h.bf16 %v2727_v23  ;;  %v1288_v39 = vunpack.c.l.bf16 %v2727_v23  ;;  %v420_v25 = vld [vmem:[%s2613_s27 + $0x168] sm:$0xff]  ;;  %1424 = vmatprep.subr.mxu1 %v1297_v31  ;;  %1354 = vmatpush2.msra.mxu0 %v1040_v32  ;;  %v499_v17 = vadd.f32 %v498_v48, %v416_v0  ;;  %v394_v32 = vld [vmem:[%s2613_s27 + $0x98] sm:$0xff] }
  0x85   : > { %v2737_v29 = vld [vmem:[%s2615_s30 + $0x7a0] sm:$0xff]  ;;  %v1025_v42 = vunpack.c.h.bf16 %v2734_v28  ;;  %v396_v26 = vld [vmem:[%s2613_s27 + $0xa8] sm:$0xff]  ;;  %1425 = vmatpush2.msra.mxu1 %v1296_v33  ;;  %1355 = vmatprep.subr.mxu0 %v1033_v36  ;;  %v422_v33 = vld [vmem:[%s2613_s27 + $0x178] sm:$0xff]  ;;  %v448_v36 = vadd.f32 %v447_v57, %v392_v9  ;;  %v473_v19 = vadd.f32 %v472_v11, %v390_v49  ;;  %v525_v15 = vadd.f32 %v524_v10, %v418_v52 }
  0x86   : > { %v2744_v34 = vld [vmem:[%s2615_s30 + $0x380] sm:$0xff]  ;;  %v1281_v43 = vunpack.c.h.bf16 %v2737_v29  ;;  %v428_v27 = vld [vmem:[%s2613_s27 + $0x1a8] sm:$0x1]  ;;  %1426 = vmatprep.subr.mxu1 %v1289_v37  ;;  %1356 = vmatpush2.msra.mxu0 %v1032_v38  ;;  %v500_v22 = vadd.f32 %v499_v17, %v420_v25  ;;  %v398_v23 = vld [vmem:[%s2613_s27 + $0xb8] sm:$0xff]  ;;  %v3371_v0 = vunpack.c.l.bf16 %v2734_v28 }
  0x87   : > { %v2747_v35 = vld [vmem:[%s2615_s30 + $0x780] sm:$0xff]  ;;  %v424_v31 = vld [vmem:[%s2613_s27 + $0x188] sm:$0xff]  ;;  %1427 = vmatpush2.msra.mxu1 %v1288_v39  ;;  %v502_v37 = vsel %vm436_vm0, %v428_v27, 0.0  ;;  %1357 = vmatprep.subr.mxu0 %v1025_v42  ;;  %v426_v38 = vld [vmem:[%s2613_s27 + $0x198] sm:$0xff]  ;;  %v476_v39 = vsel %vm436_vm0, %v402_v18, 0.0  ;;  %v449_v42 = vadd.f32 %v448_v36, %v396_v26  ;;  %v3373_v48 = vunpack.c.h.bf16 %v2744_v34 }
  0x88   : > { %v2754_v40 = vld [vmem:[%s2615_s30 + $0x360] sm:$0xff]  ;;  %1428 = vmatprep.subr.mxu1 %v1281_v43  ;;  %1358 = vmatpush2.msra.mxu0 %v3371_v0  ;;  %v526_v43 = vadd.f32 %v525_v15, %v422_v33  ;;  %v401_v27 = vld [vmem:[%s2613_s27 + $0xd0] sm:$0x1]  ;;  %v3374_v28 = vunpack.c.h.bf16 %v2747_v35  ;;  %v3375_v18 = vunpack.c.l.bf16 %v2744_v34 }
  0x89   : > { %v2757_v41 = vld [vmem:[%s2615_s30 + $0x760] sm:$0xff]  ;;  %1359 = vmatprep.subr.mxu0 %v3373_v48  ;;  %v381_v57 = vld [vmem:[%s2613_s27 + $0x30] sm:$0xff] }
  0x8a   : > { %v2764_v46 = vld [vmem:[%s2615_s30 + $0x340] sm:$0xff]  ;;  %1360 = vmatpush2.msra.mxu0 %v3375_v18  ;;  %v3378_v36 = vunpack.c.h.bf16 %v2757_v41  ;;  %v385_v15 = vld [vmem:[%s2613_s27 + $0x50] sm:$0xff] }
  0x8b   : > { %v2767_v47 = vld [vmem:[%s2615_s30 + $0x740] sm:$0xff] }
  0x8c   : > { %v2774_v54 = vld [vmem:[%s2615_s30 + $0x320] sm:$0xff] }
  0x8d   : > { %v2777_v55 = vld [vmem:[%s2615_s30 + $0x720] sm:$0xff] }
  0x8e   : > { %v2780_v58 = vld [vmem:[%s2615_s30 + $0x300] sm:$0xff]  ;;  %v3386_v48 = vunpack.c.h.bf16 %v2777_v55 }
  0x8f   : > { %v2791_v1 = vld [vmem:[%s2615_s30 + $0x700] sm:$0xff] }
  0x90   : > { %v2794_v53 = vld [vmem:[%s2615_s30 + $0x2e0] sm:$0xff] }
  0x91   : > { %v2797_v50 = vld [vmem:[%s2615_s30 + $0x6e0] sm:$0xff] }
  0x92   : > { %v2808_v61 = vld [vmem:[%s2615_s30 + $0x2c0] sm:$0xff] }
  0x93   : > { %v2811_v60 = vld [vmem:[%s2615_s30 + $0x6c0] sm:$0xff] }
  0x94   : > { %v2814_v59 = vld [vmem:[%s2615_s30 + $0x2a0] sm:$0xff] }
  0x95   : > { %v2825_v2 = vld [vmem:[%s2615_s30 + $0x6a0] sm:$0xff] }
  0x96   : > { %v2828_v51 = vld [vmem:[%s2615_s30 + $0x280] sm:$0xff] }
  0x97   : > { %v2831_v56 = vld [vmem:[%s2615_s30 + $0x680] sm:$0xff]  ;;  %v952_v24 = vunpack.c.l.bf16 %v2828_v51 }
  0x98   : > { %v2853_v8 = vld [vmem:[%s2615_s30 + $0x260] sm:$0xff] }
  0x99   : > { %v2867_v13 = vld [vmem:[%s2615_s30 + $0x660] sm:$0xff] }
  0x9a   : > { %v375_v45 = vld [vmem:[%s2613_s27] sm:$0xff]  ;;  %v1201_v30 = vunpack.c.h.bf16 %v2867_v13 }
  0x9b   : > { %v379_v4 = vld [vmem:[%s2613_s27 + $0x20] sm:$0xff] }
  0x9c   : > { %v383_v44 = vld [vmem:[%s2613_s27 + $0x40] sm:$0xff]  ;;  %v431_v6 = vadd.f32 %v379_v4, %v375_v45  ;;  %v430_v45 = vld [vmem:[%s2613_s27 + $0x1b8] sm:$0x1] }
  0x9d   : > { %v403_v62 = vld [vmem:[%s2613_s27 + $0xe0] sm:$0xff]  ;;  %v528_v25 = vsel %vm436_vm0, %v430_v45, 0.0  ;;  %v405_v45 = vld [vmem:[%s2613_s27 + $0xf0] sm:$0xff] }
  0x9e   : > { %v407_v14 = vld [vmem:[%s2613_s27 + $0x100] sm:$0xff]  ;;  %v432_v3 = vadd.f32 %v431_v6, %v383_v44  ;;  %v377_v6 = vld [vmem:[%s2613_s27 + $0x10] sm:$0xff] }
  0x9f   : > { %v387_v63 = vld [vmem:[%s2613_s27 + $0x60] sm:$0xff]  ;;  %v484_v12 = vadd.f32 %v407_v14, %v403_v62  ;;  %v3372_v62 = vunpack.c.l.bf16 %v2737_v29  ;;  %v474_v14 = vadd.f32 %v473_v19, %v394_v32  ;;  %v501_v29 = vadd.f32 %v500_v22, %v424_v31 }
  0xa0   : > { %v411_v7 = vld [vmem:[%s2613_s27 + $0x120] sm:$0xff]  ;;  %v433_v9 = vadd.f32 %v432_v3, %v387_v63  ;;  %v3376_v63 = vunpack.c.l.bf16 %v2747_v35  ;;  %v527_v32 = vadd.f32 %v526_v43, %v426_v38  ;;  %v409_v3 = vld [vmem:[%s2613_s27 + $0x110] sm:$0xff] }
  0xa1   : > { %v391_v4 = vld [vmem:[%s2613_s27 + $0x80] sm:$0xff]  ;;  %v485_v21 = vadd.f32 %v484_v12, %v411_v7  ;;  %1429 = vmatpush2.msra.mxu1 %v3372_v62  ;;  %v451_v7 = vadd.f32 %v450_v16, %v449_v42  ;;  %v475_v17 = vadd.f32 %v474_v14, %v398_v23  ;;  %v3377_v12 = vunpack.c.h.bf16 %v2754_v40  ;;  %v413_v38 = vld [vmem:[%s2613_s27 + $0x130] sm:$0xff] }
  0xa2   : > { %v399_v5 = vld [vmem:[%s2613_s27 + $0xc0] sm:$0x1]  ;;  %1430 = vmatprep.subr.mxu1 %v3374_v28  ;;  %v434_v49 = vadd.f32 %v433_v9, %v391_v4  ;;  %v503_v34 = vadd.f32 %v502_v37, %v501_v29  ;;  %v2976_v16 = vsel %vm436_vm0, %v401_v27, 0.0  ;;  %v3379_v4 = vunpack.c.l.bf16 %v2754_v40  ;;  %v389_v62 = vld [vmem:[%s2613_s27 + $0x70] sm:$0xff] }
  0xa3   : > { %v415_v20 = vld [vmem:[%s2613_s27 + $0x140] sm:$0xff]  ;;  %v437_v26 = vsel %vm436_vm0, %v399_v5, 0.0  ;;  %1431 = vmatpush2.msra.mxu1 %v3376_v63  ;;  %1361 = vmatprep.subr.mxu0 %v3377_v12  ;;  %v3380_v5 = vunpack.c.l.bf16 %v2757_v41  ;;  %v477_v22 = vadd.f32 %v476_v39, %v475_v17  ;;  %v529_v23 = vadd.f32 %v528_v25, %v527_v32  ;;  %v421_v63 = vld [vmem:[%s2613_s27 + $0x170] sm:$0xff] }
  0xa4   : > { %v427_v44 = vld [vmem:[%s2613_s27 + $0x1a0] sm:$0x1]  ;;  %v486_v52 = vadd.f32 %v485_v21, %v415_v20  ;;  %1432 = vmatprep.subr.mxu1 %v3378_v36  ;;  %1362 = vmatpush2.msra.mxu0 %v3379_v4  ;;  %v452_v20 = vrot.slane %v451_v7, 4  ;;  %v3381_v37 = vunpack.c.h.bf16 %v2764_v46  ;;  %v3382_v9 = vunpack.c.h.bf16 %v2767_v47 }
  0xa5   : > { %v395_v10 = vld [vmem:[%s2613_s27 + $0xa0] sm:$0xff]  ;;  %v489_v31 = vsel %vm436_vm0, %v427_v44, 0.0  ;;  %1433 = vmatpush2.msra.mxu1 %v3380_v5  ;;  %v458_v44 = vadd.f32 %v381_v57, %v377_v6  ;;  %v504_v21 = vrot.slane %v503_v34, 4  ;;  %v510_v42 = vadd.f32 %v409_v3, %v405_v45  ;;  %v397_v45 = vld [vmem:[%s2613_s27 + $0xb0] sm:$0xff] }
  0xa6   : > { %v419_v11 = vld [vmem:[%s2613_s27 + $0x160] sm:$0xff]  ;;  %v435_v19 = vadd.f32 %v434_v49, %v395_v10  ;;  %1363 = vmatprep.subr.mxu0 %v3381_v37  ;;  %1434 = vmatprep.subr.mxu1 %v3382_v9  ;;  %v3383_v41 = vunpack.c.l.bf16 %v2764_v46  ;;  %v3384_v39 = vunpack.c.l.bf16 %v2767_v47  ;;  %v453_v14 = vadd.f32 %v452_v20, %v451_v7  ;;  %v417_v10 = vld [vmem:[%s2613_s27 + $0x150] sm:$0xff] }
  0xa7   : > { %v423_v33 = vld [vmem:[%s2613_s27 + $0x180] sm:$0xff]  ;;  %v487_v35 = vadd.f32 %v486_v52, %v419_v11  ;;  %v478_v43 = vrot.slane %v477_v22, 4  ;;  %v530_v25 = vrot.slane %v529_v23, 4  ;;  %v459_v11 = vadd.f32 %v458_v44, %v385_v15  ;;  %v393_v49 = vld [vmem:[%s2613_s27 + $0x90] sm:$0xff] }
  0xa8   : > { %v438_v0 = vadd.f32 %v437_v26, %v435_v19  ;;  %1364 = vmatpush2.msra.mxu0 %v3383_v41  ;;  %1435 = vmatpush2.msra.mxu1 %v3384_v39  ;;  %v3385_v27 = vunpack.c.h.bf16 %v2774_v54  ;;  %v505_v28 = vadd.f32 %v504_v21, %v503_v34  ;;  %v511_v47 = vadd.f32 %v510_v42, %v413_v38  ;;  %v425_v15 = vld [vmem:[%s2613_s27 + $0x190] sm:$0xff] }
  0xa9   : > { %v488_v40 = vadd.f32 %v487_v35, %v423_v33  ;;  %1436 = vmatprep.subr.mxu1 %v3386_v48  ;;  %v3387_v26 = vunpack.c.l.bf16 %v2774_v54  ;;  %v3388_v52 = vunpack.c.l.bf16 %v2777_v55  ;;  %v454_v6 = vrot.slane %v453_v14, 2  ;;  %v429_v55 = vld [vmem:[%s2613_s27 + $0x1b0] sm:$0x1] }
  0xaa   : > { %1365 = vmatprep.subr.mxu0 %v3385_v27  ;;  %v439_v29 = vrot.slane %v438_v0, 4  ;;  %v479_v57 = vadd.f32 %v478_v43, %v477_v22  ;;  %v531_v18 = vadd.f32 %v530_v25, %v529_v23  ;;  %v460_v7 = vadd.f32 %v459_v11, %v389_v62  ;;  %v3021_v22 = vld [vmem:[%s2615_s30 + $0x240] sm:$0xff] }
  0xab   : > { %v490_v46 = vadd.f32 %v489_v31, %v488_v40  ;;  %1366 = vmatpush2.msra.mxu0 %v3387_v26  ;;  %1437 = vmatpush2.msra.mxu1 %v3388_v52  ;;  %v3389_v17 = vunpack.c.h.bf16 %v2780_v58  ;;  %v3390_v32 = vunpack.c.h.bf16 %v2791_v1  ;;  %v506_v33 = vrot.slane %v505_v28, 2  ;;  %v3024_v23 = vld [vmem:[%s2615_s30 + $0x640] sm:$0xff] }
  0xac   : > { %v440_v54 = vadd.f32 %v439_v29, %v438_v0  ;;  %v512_v3 = vadd.f32 %v511_v47, %v417_v10  ;;  %v3391_v12 = vunpack.c.l.bf16 %v2780_v58  ;;  %v3392_v36 = vunpack.c.l.bf16 %v2791_v1 }
  0xad   : > { %1367 = vmatprep.subr.mxu0 %v3389_v17  ;;  %1438 = vmatprep.subr.mxu1 %v3390_v32  ;;  %v491_v31 = vrot.slane %v490_v46, 4  ;;  %v3013_v34 = vadd.f32 %v454_v6, %v453_v14  ;;  %v480_v19 = vrot.slane %v479_v57, 2  ;;  %v532_v35 = vrot.slane %v531_v18, 2 }
  0xae   : > { %1368 = vmatpush2.msra.mxu0 %v3391_v12  ;;  %1439 = vmatpush2.msra.mxu1 %v3392_v36  ;;  %v461_v4 = vadd.f32 %v460_v7, %v393_v49  ;;  %v3393_v5 = vunpack.c.h.bf16 %v2794_v53  ;;  %v3394_v20 = vunpack.c.h.bf16 %v2797_v50  ;;  %v507_v58 = vadd.f32 %v506_v33, %v505_v28  ;;  %v600_v33 = vld [vmem:[%s2615_s30 + $0x200] sm:$0xff] }
  0xaf   : > { %v441_v38 = vrot.slane %v440_v54, 2  ;;  %v492_v1 = vadd.f32 %v491_v31, %v490_v46  ;;  %v513_v44 = vadd.f32 %v512_v3, %v421_v63  ;;  %v3395_v37 = vunpack.c.l.bf16 %v2794_v53  ;;  %v732_v46 = vld [vmem:[%s2615_s30 + $0x620] sm:$0xff] }
  0xb0   : > { %1369 = vmatprep.subr.mxu0 %v3393_v5  ;;  %1440 = vmatprep.subr.mxu1 %v3394_v20  ;;  %v3396_v9 = vunpack.c.l.bf16 %v2797_v50  ;;  %v481_v21 = vadd.f32 %v480_v19, %v479_v57  ;;  %v533_v0 = vadd.f32 %v532_v35, %v531_v18  ;;  %v462_v40 = vadd.f32 %v461_v4, %v397_v45  ;;  %v728_v12 = vld [vmem:[%s2615_s30 + $0x600] sm:$0xff] }
  0xb1   : > { %1370 = vmatpush2.msra.mxu0 %v3395_v37  ;;  %v515_v62 = vsel %vm436_vm0, %v429_v55, 0.0  ;;  %v3397_v42 = vunpack.c.h.bf16 %v2808_v61  ;;  %v3398_v41 = vunpack.c.h.bf16 %v2811_v60  ;;  %v944_v53 = vunpack.c.l.bf16 %v2853_v8 }
  0xb2   : > { %1441 = vmatpush2.msra.mxu1 %v3396_v9  ;;  %v442_v39 = vadd.f32 %v441_v38, %v440_v54  ;;  %v493_v14 = vrot.slane %v492_v1, 2  ;;  %v514_v50 = vadd.f32 %v513_v44, %v425_v15  ;;  %v3399_v43 = vunpack.c.l.bf16 %v2808_v61  ;;  %v604_v61 = vld [vmem:[%s2615_s30 + $0x220] sm:$0xff]  ;;  %v725_v38 = vld [vmem:[%s2615_s30 + $0x5e8] sm:$0xff] }
  0xb3   : > { %1371 = vmatprep.subr.mxu0 %v3397_v42  ;;  %1442 = vmatprep.subr.mxu1 %v3398_v41  ;;  %v3400_v25 = vunpack.c.l.bf16 %v2811_v60  ;;  %v1200_v10 = vunpack.c.l.bf16 %v2867_v13  ;;  %v937_v11 = vunpack.c.h.bf16 %v3021_v22  ;;  %v1193_v27 = vunpack.c.h.bf16 %v3024_v23  ;;  %v593_v9 = vld [vmem:[%s2615_s30 + $0x1c8] sm:$0xff] }
  0xb4   : > { %1372 = vmatpush2.msra.mxu0 %v3399_v43  ;;  %v464_v48 = vadd.f32 %v2976_v16, %v462_v40  ;;  %v3401_v28 = vunpack.c.h.bf16 %v2814_v59  ;;  %v3402_v29 = vunpack.c.h.bf16 %v2825_v2  ;;  %v456_v60 = vrot.slane %v3013_v34, 1 }
  0xb5   : > { %1443 = vmatpush2.msra.mxu1 %v3400_v25  ;;  %v508_v49 = vrot.slane %v507_v58, 1  ;;  %v494_v47 = vadd.f32 %v493_v14, %v492_v1  ;;  %v516_v26 = vadd.f32 %v515_v62, %v514_v50  ;;  %v3403_v52 = vunpack.c.l.bf16 %v2814_v59  ;;  %v589_v14 = vld [vmem:[%s2615_s30 + $0x1a8] sm:$0xff] }
  0xb6   : > { %1373 = vmatprep.subr.mxu0 %v3401_v28  ;;  %1444 = vmatprep.subr.mxu1 %v3402_v29  ;;  %v3404_v6 = vunpack.c.l.bf16 %v2825_v2  ;;  %v936_v16 = vunpack.c.l.bf16 %v3021_v22  ;;  %v482_v57 = vrot.slane %v481_v21, 1  ;;  %v534_v18 = vrot.slane %v533_v0, 1 }
  0xb7   : > { %1374 = vmatpush2.msra.mxu0 %v3403_v52  ;;  %v465_v63 = vrot.slane %v464_v48, 4  ;;  %v3405_v7 = vunpack.c.h.bf16 %v2828_v51  ;;  %v3406_v17 = vunpack.c.h.bf16 %v2831_v56  ;;  %v1192_v32 = vunpack.c.l.bf16 %v3024_v23  ;;  %v597_v23 = vld [vmem:[%s2615_s30 + $0x1e8] sm:$0xff] }
  0xb8   : > { %1445 = vmatpush2.msra.mxu1 %v3404_v6  ;;  %v443_v59 = vrot.slane %v442_v39, 1  ;;  %v495_v54 = vrot.slane %v494_v47, 1  ;;  %v517_v31 = vrot.slane %v516_v26, 4  ;;  %v3407_v2 = vunpack.c.l.bf16 %v2831_v56 }
  0xb9   : > { %1375 = vmatprep.subr.mxu0 %v3405_v7  ;;  %1446 = vmatprep.subr.mxu1 %v3406_v17  ;;  %v929_v45 = vunpack.c.h.bf16 %v604_v61  ;;  %v1185_v55 = vunpack.c.h.bf16 %v732_v46  ;;  %v928_v3 = vunpack.c.l.bf16 %v604_v61  ;;  %v466_v36 = vadd.f32 %v465_v63, %v464_v48  ;;  %v585_v48 = vld [vmem:[%s2615_s30 + $0x188] sm:$0xff] }
  0xba   : > { %1376 = vmatpush2.msra.mxu0 %v952_v24  ;;  %1447 = vmatpush2.msra.mxu1 %v3407_v2  ;;  %v3408_v19 = vunpack.c.h.bf16 %v2853_v8  ;;  %v1184_v35 = vunpack.c.l.bf16 %v732_v46  ;;  %v457_v15 = vadd.f32 %v456_v60, %v3013_v34  ;;  %v509_v51 = vadd.f32 %v508_v49, %v507_v58  ;;  %v713_v49 = vld [vmem:[%s2615_s30 + $0x588] sm:$0xff] }
  0xbb   : > { %1448 = vmatprep.subr.mxu1 %v1201_v30  ;;  %v518_v24 = vadd.f32 %v517_v31, %v516_v26  ;;  %v921_v56 = vunpack.c.h.bf16 %v600_v33  ;;  %v483_v4 = vadd.f32 %v482_v57, %v481_v21  ;;  %v535_v5 = vadd.f32 %v534_v18, %v533_v0  ;;  %v709_v57 = vld [vmem:[%s2615_s30 + $0x568] sm:$0xff] }
  0xbc   : > { %1377 = vmatprep.subr.mxu0 %v3408_v19  ;;  %1449 = vmatpush2.msra.mxu1 %v1200_v10  ;;  %v467_v20 = vrot.slane %v466_v36, 2  ;;  %v1177_v8 = vunpack.c.h.bf16 %v728_v12  ;;  %v444_v22 = vadd.f32 %v443_v59, %v442_v39  ;;  %v496_v13 = vadd.f32 %v495_v54, %v494_v47  ;;  %v721_v39 = vld [vmem:[%s2615_s30 + $0x5c8] sm:$0xff] }
  0xbd   : > { %1378 = vmatpush2.msra.mxu0 %v944_v53  ;;  %1450 = vmatprep.subr.mxu1 %v1193_v27  ;;  %v519_v30 = vrot.slane %v518_v24, 2  ;;  %v920_v34 = vunpack.c.l.bf16 %v600_v33  ;;  %v3075_v1 = vsel %vm1312_vm1, %v509_v51, %v457_v15  ;;  %v1176_v44 = vunpack.c.l.bf16 %v728_v12  ;;  %v717_v27 = vld [vmem:[%s2615_s30 + $0x5a8] sm:$0xff] }
  0xbe   : > { %1379 = vmatprep.subr.mxu0 %v937_v11  ;;  %1451 = vmatpush2.msra.mxu1 %v1192_v32  ;;  %v468_v58 = vadd.f32 %v467_v20, %v466_v36  ;;  %v3079_v21 = vsel %vm1312_vm1, %v535_v5, %v483_v4  ;;  %v915_v40 = vunpack.c.h.bf16 %v597_v23  ;;  %v3082_v62 = vsel %vm1312_vm1, %v496_v13, %v444_v22  ;;  %v581_v47 = vld [vmem:[%s2615_s30 + $0x168] sm:$0xff] }
  0xbf   : > { %1380 = vmatpush2.msra.mxu0 %v936_v16  ;;  %1452 = vmatprep.subr.mxu1 %v1185_v55  ;;  %v520_v37 = vadd.f32 %v519_v30, %v518_v24  ;;  %v914_v41 = vunpack.c.l.bf16 %v597_v23  ;;  %v1171_v53 = vunpack.c.h.bf16 %v725_v38  ;;  %v907_v43 = vunpack.c.h.bf16 %v593_v9  ;;  %v577_v18 = vld [vmem:[%s2615_s30 + $0x148] sm:$0xff] }
  0xc0   : > { %1381 = vmatprep.subr.mxu0 %v929_v45  ;;  %1453 = vmatpush2.msra.mxu1 %v1184_v35  ;;  %v469_v0 = vrot.slane %v468_v58, 1  ;;  %v1170_v10 = vunpack.c.l.bf16 %v725_v38  ;;  %v906_v11 = vunpack.c.l.bf16 %v593_v9  ;;  %v1163_v28 = vunpack.c.h.bf16 %v721_v39  ;;  %v705_v33 = vld [vmem:[%s2615_s30 + $0x548] sm:$0xff] }
  0xc1   : > { %1382 = vmatpush2.msra.mxu0 %v928_v3  ;;  %1454 = vmatprep.subr.mxu1 %v1177_v8  ;;  %v521_v42 = vrot.slane %v520_v37, 1  ;;  %v899_v29 = vunpack.c.h.bf16 %v589_v14  ;;  %v1162_v46 = vunpack.c.l.bf16 %v721_v39  ;;  %v898_v60 = vunpack.c.l.bf16 %v589_v14  ;;  %v573_v59 = vld [vmem:[%s2615_s30 + $0x128] sm:$0xff] }
  0xc2   : > { %1383 = vmatprep.subr.mxu0 %v921_v56  ;;  %1385 = vmatprep.mubr.f32.mxu0 %v3075_v1  ;;  %v470_v50 = vadd.f32 %v469_v0, %v468_v58  ;;  %v1155_v26 = vunpack.c.h.bf16 %v717_v27  ;;  %v891_v52 = vunpack.c.h.bf16 %v585_v48  ;;  %v1154_v6 = vunpack.c.l.bf16 %v717_v27  ;;  %v701_v55 = vld [vmem:[%s2615_s30 + $0x528] sm:$0xff] }
  0xc3   : > { %1384 = vmatpush2.msra.mxu0 %v920_v34  ;;  %1455 = vmatpush2.msra.mxu1 %v1176_v44  ;;  %v522_v25 = vadd.f32 %v521_v42, %v520_v37  ;;  %v890_v16 = vunpack.c.l.bf16 %v585_v48  ;;  %v1147_v63 = vunpack.c.h.bf16 %v713_v49  ;;  %v883_v7 = vunpack.c.h.bf16 %v581_v47  ;;  %v569_v3 = vld [vmem:[%s2615_s30 + $0x108] sm:$0xff] }
  0xc4   : > { %1456 = vmatprep.mubr.f32.mxu1 %v3079_v21  ;;  %1386 = vmatmul.mubr.f32.vlgmr.msra.gmra.mxu0 %v3082_v62  ;;  %v1146_v17 = vunpack.c.l.bf16 %v713_v49  ;;  %v882_v32 = vunpack.c.l.bf16 %v581_v47  ;;  %v1139_v54 = vunpack.c.h.bf16 %v709_v57  ;;  %v875_v31 = vunpack.c.h.bf16 %v577_v18  ;;  %v697_v15 = vld [vmem:[%s2615_s30 + $0x508] sm:$0xff] }
  0xc5   : > { %1463 = vmatprep.subr.mxu0 %v915_v40  ;;  %v3092_v61 = vsel %vm1312_vm1, %v522_v25, %v470_v50  ;;  %1534 = vmatprep.subr.mxu1 %v1171_v53  ;;  %v1138_v2 = vunpack.c.l.bf16 %v709_v57  ;;  %v874_v45 = vunpack.c.l.bf16 %v577_v18  ;;  %v1131_v12 = vunpack.c.h.bf16 %v705_v33  ;;  %v565_v51 = vld [vmem:[%s2615_s30 + $0xe8] sm:$0xff] }
  0xc6   : > { %1464 = vmatpush1.msra.mxu0 %v914_v41  ;;  %1457 = vmatmul.mubr.f32.vlgmr.msra.gmra.mxu1 %v3092_v61  ;;  %v867_v36 = vunpack.c.h.bf16 %v573_v59  ;;  %v1130_v19 = vunpack.c.l.bf16 %v705_v33  ;;  %v866_v35 = vunpack.c.l.bf16 %v573_v59  ;;  %v1123_v24 = vunpack.c.h.bf16 %v701_v55  ;;  %v693_v20 = vld [vmem:[%s2615_s30 + $0x4e8] sm:$0xff] }
  0xc7   : > { %1465 = vmatprep.subr.mxu0 %v907_v43  ;;  %1535 = vmatpush1.msra.mxu1 %v1170_v10  ;;  %v859_v56 = vunpack.c.h.bf16 %v569_v3  ;;  %v1122_v4 = vunpack.c.l.bf16 %v701_v55  ;;  %v858_v5 = vunpack.c.l.bf16 %v569_v3  ;;  %v561_v8 = vld [vmem:[%s2615_s30 + $0xc8] sm:$0xff]  ;;  %v1115_v22 = vunpack.c.h.bf16 %v697_v15 }
  0xc8   : > { %1466 = vmatpush1.msra.mxu0 %v906_v11  ;;  %1536 = vmatprep.subr.mxu1 %v1163_v28  ;;  %v851_v13 = vunpack.c.h.bf16 %v565_v51  ;;  %v1114_v30 = vunpack.c.l.bf16 %v697_v15  ;;  %v850_v23 = vunpack.c.l.bf16 %v565_v51  ;;  %v689_v34 = vld [vmem:[%s2615_s30 + $0x4c8] sm:$0xff]  ;;  %v1107_v38 = vunpack.c.h.bf16 %v693_v20 }
  0xc9   : > { %1467 = vmatprep.subr.mxu0 %v899_v29  ;;  %1537 = vmatpush1.msra.mxu1 %v1162_v46  ;;  %v557_v58 = vld [vmem:[%s2615_s30 + $0xa8] sm:$0xff]  ;;  %v843_v44 = vunpack.c.h.bf16 %v561_v8  ;;  %v1106_v37 = vunpack.c.l.bf16 %v693_v20  ;;  %v842_v9 = vunpack.c.l.bf16 %v561_v8  ;;  %v1099_v42 = vunpack.c.h.bf16 %v689_v34 }
  0xca   : > { %1468 = vmatpush1.msra.mxu0 %v898_v60  ;;  %1538 = vmatprep.subr.mxu1 %v1155_v26  ;;  %v685_v0 = vld [vmem:[%s2615_s30 + $0x4a8] sm:$0xff]  ;;  %v835_v41 = vunpack.c.h.bf16 %v557_v58  ;;  %v1098_v53 = vunpack.c.l.bf16 %v689_v34  ;;  %v834_v39 = vunpack.c.l.bf16 %v557_v58 }
  0xcb   : > { %1469 = vmatprep.subr.mxu0 %v891_v52  ;;  %1539 = vmatpush1.msra.mxu1 %v1154_v6  ;;  %v553_v40 = vld [vmem:[%s2615_s30 + $0x88] sm:$0xff]  ;;  %v1091_v43 = vunpack.c.h.bf16 %v685_v0  ;;  %v1090_v10 = vunpack.c.l.bf16 %v685_v0 }
  0xcc   : > { %1470 = vmatpush1.msra.mxu0 %v890_v16  ;;  %1540 = vmatprep.subr.mxu1 %v1147_v63  ;;  %v681_v14 = vld [vmem:[%s2615_s30 + $0x488] sm:$0xff]  ;;  %v827_v25 = vunpack.c.h.bf16 %v553_v40  ;;  %v826_v11 = vunpack.c.l.bf16 %v553_v40 }
  0xcd   : > { %1471 = vmatprep.subr.mxu0 %v883_v7  ;;  %1541 = vmatpush1.msra.mxu1 %v1146_v17  ;;  %v549_v50 = vld [vmem:[%s2615_s30 + $0x68] sm:$0xff]  ;;  %v1083_v28 = vunpack.c.h.bf16 %v681_v14  ;;  %v1082_v46 = vunpack.c.l.bf16 %v681_v14 }
  0xce   : > { %1472 = vmatpush1.msra.mxu0 %v882_v32  ;;  %1542 = vmatprep.subr.mxu1 %v1139_v54  ;;  %v677_v27 = vld [vmem:[%s2615_s30 + $0x468] sm:$0xff]  ;;  %v819_v29 = vunpack.c.h.bf16 %v549_v50  ;;  %v818_v60 = vunpack.c.l.bf16 %v549_v50 }
  0xcf   : > { %1473 = vmatprep.subr.mxu0 %v875_v31  ;;  %1543 = vmatpush1.msra.mxu1 %v1138_v2  ;;  %v545_v48 = vld [vmem:[%s2615_s30 + $0x48] sm:$0xff]  ;;  %v1075_v26 = vunpack.c.h.bf16 %v677_v27  ;;  %v1074_v6 = vunpack.c.l.bf16 %v677_v27 }
  0xd0   : > { %1474 = vmatpush1.msra.mxu0 %v874_v45  ;;  %1544 = vmatprep.subr.mxu1 %v1131_v12  ;;  %v673_v49 = vld [vmem:[%s2615_s30 + $0x448] sm:$0xff]  ;;  %v811_v52 = vunpack.c.h.bf16 %v545_v48  ;;  %v810_v16 = vunpack.c.l.bf16 %v545_v48 }
  0xd1   : > { %1475 = vmatprep.subr.mxu0 %v867_v36  ;;  %1545 = vmatpush1.msra.mxu1 %v1130_v19  ;;  %v541_v47 = vld [vmem:[%s2615_s30 + $0x28] sm:$0xff]  ;;  %v1067_v63 = vunpack.c.h.bf16 %v673_v49  ;;  %v1066_v17 = vunpack.c.l.bf16 %v673_v49 }
  0xd2   : > { %1476 = vmatpush1.msra.mxu0 %v866_v35  ;;  %1546 = vmatprep.subr.mxu1 %v1123_v24  ;;  %v669_v57 = vld [vmem:[%s2615_s30 + $0x428] sm:$0xff]  ;;  %v803_v7 = vunpack.c.h.bf16 %v541_v47  ;;  %v802_v32 = vunpack.c.l.bf16 %v541_v47 }
  0xd3   : > { %1477 = vmatprep.subr.mxu0 %v859_v56  ;;  %1547 = vmatpush1.msra.mxu1 %v1122_v4  ;;  %v537_v18 = vld [vmem:[%s2615_s30 + $0x8] sm:$0xff]  ;;  %v1059_v54 = vunpack.c.h.bf16 %v669_v57  ;;  %v1058_v2 = vunpack.c.l.bf16 %v669_v57 }
  0xd4   : > { %1478 = vmatpush1.msra.mxu0 %v858_v5  ;;  %1548 = vmatprep.subr.mxu1 %v1115_v22  ;;  %v665_v33 = vld [vmem:[%s2615_s30 + $0x408] sm:$0xff]  ;;  %v795_v31 = vunpack.c.h.bf16 %v537_v18  ;;  %v794_v45 = vunpack.c.l.bf16 %v537_v18 }
  0xd5   : > { %1479 = vmatprep.subr.mxu0 %v851_v13  ;;  %1549 = vmatpush1.msra.mxu1 %v1114_v30  ;;  %v661_v59 = vld [vmem:[%s2615_s30 + $0x3e8] sm:$0xff]  ;;  %v1051_v12 = vunpack.c.h.bf16 %v665_v33  ;;  %v1050_v19 = vunpack.c.l.bf16 %v665_v33 }
  0xd6   : > { %1480 = vmatpush1.msra.mxu0 %v850_v23  ;;  %1550 = vmatprep.subr.mxu1 %v1107_v38  ;;  %v789_v55 = vld [vmem:[%s2615_s30 + $0x7e8] sm:$0xff]  ;;  %v1043_v36 = vunpack.c.h.bf16 %v661_v59  ;;  %v1042_v35 = vunpack.c.l.bf16 %v661_v59 }
  0xd7   : > { %1481 = vmatprep.subr.mxu0 %v843_v44  ;;  %1551 = vmatpush1.msra.mxu1 %v1106_v37  ;;  %v657_v3 = vld [vmem:[%s2615_s30 + $0x3c8] sm:$0xff]  ;;  %v1299_v24 = vunpack.c.h.bf16 %v789_v55  ;;  %v1298_v4 = vunpack.c.l.bf16 %v789_v55 }
  0xd8   : > { %1482 = vmatpush1.msra.mxu0 %v842_v9  ;;  %1552 = vmatprep.subr.mxu1 %v1099_v42  ;;  %v785_v15 = vld [vmem:[%s2615_s30 + $0x7c8] sm:$0xff]  ;;  %v1035_v56 = vunpack.c.h.bf16 %v657_v3  ;;  %v1034_v5 = vunpack.c.l.bf16 %v657_v3 }
  0xd9   : > { %1483 = vmatprep.subr.mxu0 %v835_v41  ;;  %1553 = vmatpush1.msra.mxu1 %v1098_v53  ;;  %v653_v51 = vld [vmem:[%s2615_s30 + $0x3a8] sm:$0xff]  ;;  %v1291_v22 = vunpack.c.h.bf16 %v785_v15  ;;  %v1290_v30 = vunpack.c.l.bf16 %v785_v15 }
  0xda   : > { %1484 = vmatpush1.msra.mxu0 %v834_v39  ;;  %1554 = vmatprep.subr.mxu1 %v1091_v43  ;;  %v781_v20 = vld [vmem:[%s2615_s30 + $0x7a8] sm:$0xff]  ;;  %v1027_v13 = vunpack.c.h.bf16 %v653_v51  ;;  %v1026_v23 = vunpack.c.l.bf16 %v653_v51 }
  0xdb   : > { %1485 = vmatprep.subr.mxu0 %v827_v25  ;;  %1555 = vmatpush1.msra.mxu1 %v1090_v10  ;;  %v649_v8 = vld [vmem:[%s2615_s30 + $0x388] sm:$0xff]  ;;  %v1283_v38 = vunpack.c.h.bf16 %v781_v20  ;;  %v1282_v37 = vunpack.c.l.bf16 %v781_v20 }
  0xdc   : > { %1486 = vmatpush1.msra.mxu0 %v826_v11  ;;  %1556 = vmatprep.subr.mxu1 %v1083_v28  ;;  %v777_v34 = vld [vmem:[%s2615_s30 + $0x788] sm:$0xff]  ;;  %v1019_v44 = vunpack.c.h.bf16 %v649_v8  ;;  %v1018_v9 = vunpack.c.l.bf16 %v649_v8 }
  0xdd   : > { %1487 = vmatprep.subr.mxu0 %v819_v29  ;;  %1557 = vmatpush1.msra.mxu1 %v1082_v46  ;;  %v645_v58 = vld [vmem:[%s2615_s30 + $0x368] sm:$0xff]  ;;  %v1275_v42 = vunpack.c.h.bf16 %v777_v34  ;;  %v1274_v53 = vunpack.c.l.bf16 %v777_v34 }
  0xde   : > { %1488 = vmatpush1.msra.mxu0 %v818_v60  ;;  %1558 = vmatprep.subr.mxu1 %v1075_v26  ;;  %v773_v0 = vld [vmem:[%s2615_s30 + $0x768] sm:$0xff]  ;;  %v1011_v41 = vunpack.c.h.bf16 %v645_v58  ;;  %v1010_v39 = vunpack.c.l.bf16 %v645_v58 }
  0xdf   : > { %1489 = vmatprep.subr.mxu0 %v811_v52  ;;  %1559 = vmatpush1.msra.mxu1 %v1074_v6  ;;  %v641_v40 = vld [vmem:[%s2615_s30 + $0x348] sm:$0xff]  ;;  %v1267_v43 = vunpack.c.h.bf16 %v773_v0  ;;  %v1266_v10 = vunpack.c.l.bf16 %v773_v0 }
  0xe0   : > { %1490 = vmatpush1.msra.mxu0 %v810_v16  ;;  %1560 = vmatprep.subr.mxu1 %v1067_v63  ;;  %v769_v14 = vld [vmem:[%s2615_s30 + $0x748] sm:$0xff]  ;;  %v1003_v25 = vunpack.c.h.bf16 %v641_v40  ;;  %v1002_v11 = vunpack.c.l.bf16 %v641_v40 }
  0xe1   : > { %1491 = vmatprep.subr.mxu0 %v803_v7  ;;  %1561 = vmatpush1.msra.mxu1 %v1066_v17  ;;  %v637_v50 = vld [vmem:[%s2615_s30 + $0x328] sm:$0xff]  ;;  %v1259_v28 = vunpack.c.h.bf16 %v769_v14  ;;  %v1258_v46 = vunpack.c.l.bf16 %v769_v14 }
  0xe2   : > { %1492 = vmatpush1.msra.mxu0 %v802_v32  ;;  %1562 = vmatprep.subr.mxu1 %v1059_v54  ;;  %v765_v27 = vld [vmem:[%s2615_s30 + $0x728] sm:$0xff]  ;;  %v995_v29 = vunpack.c.h.bf16 %v637_v50  ;;  %v994_v60 = vunpack.c.l.bf16 %v637_v50 }
  0xe3   : > { %1493 = vmatprep.subr.mxu0 %v795_v31  ;;  %1563 = vmatpush1.msra.mxu1 %v1058_v2  ;;  %v633_v48 = vld [vmem:[%s2615_s30 + $0x308] sm:$0xff]  ;;  %v1251_v26 = vunpack.c.h.bf16 %v765_v27  ;;  %v1250_v6 = vunpack.c.l.bf16 %v765_v27  ;;  %v598_v27 = vld [vmem:[%s2615_s30 + $0x1f0] sm:$0xff] }
  0xe4   : > { %1494 = vmatpush1.msra.mxu0 %v794_v45  ;;  %1564 = vmatprep.subr.mxu1 %v1051_v12  ;;  %v761_v49 = vld [vmem:[%s2615_s30 + $0x708] sm:$0xff]  ;;  %v987_v52 = vunpack.c.h.bf16 %v633_v48  ;;  %v986_v16 = vunpack.c.l.bf16 %v633_v48  ;;  %v726_v48 = vld [vmem:[%s2615_s30 + $0x5f0] sm:$0xff] }
  0xe5   : > { %1495 = vmatprep.subr.mxu0 %v1043_v36  ;;  %1565 = vmatpush1.msra.mxu1 %v1050_v19  ;;  %v629_v47 = vld [vmem:[%s2615_s30 + $0x2e8] sm:$0xff]  ;;  %v1243_v63 = vunpack.c.h.bf16 %v761_v49  ;;  %v1242_v17 = vunpack.c.l.bf16 %v761_v49  ;;  %v1173_v49 = vunpack.c.h.bf16 %v726_v48 }
  0xe6   : > { %1496 = vmatpush2.msra.mxu0 %v1042_v35  ;;  %1566 = vmatprep.subr.mxu1 %v1299_v24  ;;  %v757_v57 = vld [vmem:[%s2615_s30 + $0x6e8] sm:$0xff]  ;;  %v979_v7 = vunpack.c.h.bf16 %v629_v47  ;;  %v978_v32 = vunpack.c.l.bf16 %v629_v47  ;;  %v916_v47 = vunpack.c.l.bf16 %v598_v27 }
  0xe7   : > { %1497 = vmatprep.subr.mxu0 %v1035_v56  ;;  %1567 = vmatpush2.msra.mxu1 %v1298_v4  ;;  %v625_v18 = vld [vmem:[%s2615_s30 + $0x2c8] sm:$0xff]  ;;  %v1235_v54 = vunpack.c.h.bf16 %v757_v57  ;;  %v1234_v2 = vunpack.c.l.bf16 %v757_v57 }
  0xe8   : > { %1498 = vmatpush2.msra.mxu0 %v1034_v5  ;;  %1568 = vmatprep.subr.mxu1 %v1291_v22  ;;  %v753_v33 = vld [vmem:[%s2615_s30 + $0x6c8] sm:$0xff]  ;;  %v971_v31 = vunpack.c.h.bf16 %v625_v18  ;;  %v970_v45 = vunpack.c.l.bf16 %v625_v18 }
  0xe9   : > { %1499 = vmatprep.subr.mxu0 %v1027_v13  ;;  %1569 = vmatpush2.msra.mxu1 %v1290_v30  ;;  %v621_v59 = vld [vmem:[%s2615_s30 + $0x2a8] sm:$0xff]  ;;  %v1227_v12 = vunpack.c.h.bf16 %v753_v33  ;;  %v1226_v19 = vunpack.c.l.bf16 %v753_v33 }
  0xea   : > { %1500 = vmatpush2.msra.mxu0 %v1026_v23  ;;  %1570 = vmatprep.subr.mxu1 %v1283_v38  ;;  %v749_v55 = vld [vmem:[%s2615_s30 + $0x6a8] sm:$0xff]  ;;  %v963_v36 = vunpack.c.h.bf16 %v621_v59  ;;  %v962_v35 = vunpack.c.l.bf16 %v621_v59 }
  0xeb   : > { %1501 = vmatprep.subr.mxu0 %v1019_v44  ;;  %1571 = vmatpush2.msra.mxu1 %v1282_v37  ;;  %v617_v3 = vld [vmem:[%s2615_s30 + $0x288] sm:$0xff]  ;;  %v1219_v24 = vunpack.c.h.bf16 %v749_v55  ;;  %v1218_v4 = vunpack.c.l.bf16 %v749_v55 }
  0xec   : > { %1502 = vmatpush2.msra.mxu0 %v1018_v9  ;;  %1572 = vmatprep.subr.mxu1 %v1275_v42  ;;  %v745_v15 = vld [vmem:[%s2615_s30 + $0x688] sm:$0xff]  ;;  %v955_v56 = vunpack.c.h.bf16 %v617_v3  ;;  %v954_v5 = vunpack.c.l.bf16 %v617_v3 }
  0xed   : > { %1503 = vmatprep.subr.mxu0 %v1011_v41  ;;  %1573 = vmatpush2.msra.mxu1 %v1274_v53  ;;  %v613_v51 = vld [vmem:[%s2615_s30 + $0x268] sm:$0xff]  ;;  %v1211_v22 = vunpack.c.h.bf16 %v745_v15  ;;  %v1210_v30 = vunpack.c.l.bf16 %v745_v15 }
  0xee   : > { %1504 = vmatpush2.msra.mxu0 %v1010_v39  ;;  %1574 = vmatprep.subr.mxu1 %v1267_v43  ;;  %v741_v20 = vld [vmem:[%s2615_s30 + $0x668] sm:$0xff]  ;;  %v947_v13 = vunpack.c.h.bf16 %v613_v51  ;;  %v946_v23 = vunpack.c.l.bf16 %v613_v51 }
  0xef   : > { %1505 = vmatprep.subr.mxu0 %v1003_v25  ;;  %1575 = vmatpush2.msra.mxu1 %v1266_v10  ;;  %v609_v8 = vld [vmem:[%s2615_s30 + $0x248] sm:$0xff]  ;;  %v1203_v38 = vunpack.c.h.bf16 %v741_v20  ;;  %v1202_v37 = vunpack.c.l.bf16 %v741_v20 }
  0xf0   : > { %1506 = vmatpush2.msra.mxu0 %v1002_v11  ;;  %1576 = vmatprep.subr.mxu1 %v1259_v28  ;;  %v737_v34 = vld [vmem:[%s2615_s30 + $0x648] sm:$0xff]  ;;  %v939_v44 = vunpack.c.h.bf16 %v609_v8  ;;  %v938_v9 = vunpack.c.l.bf16 %v609_v8 }
  0xf1   : > { %1507 = vmatprep.subr.mxu0 %v995_v29  ;;  %1577 = vmatpush2.msra.mxu1 %v1258_v46  ;;  %v605_v58 = vld [vmem:[%s2615_s30 + $0x228] sm:$0xff]  ;;  %v1195_v42 = vunpack.c.h.bf16 %v737_v34  ;;  %v1194_v53 = vunpack.c.l.bf16 %v737_v34  ;;  %v594_v29 = vld [vmem:[%s2615_s30 + $0x1d0] sm:$0xff] }
  0xf2   : > { %1508 = vmatpush2.msra.mxu0 %v994_v60  ;;  %1578 = vmatprep.subr.mxu1 %v1251_v26  ;;  %v733_v0 = vld [vmem:[%s2615_s30 + $0x628] sm:$0xff]  ;;  %v931_v41 = vunpack.c.h.bf16 %v605_v58  ;;  %v930_v39 = vunpack.c.l.bf16 %v605_v58  ;;  %v722_v46 = vld [vmem:[%s2615_s30 + $0x5d0] sm:$0xff]  ;;  %v917_v60 = vunpack.c.h.bf16 %v598_v27  ;;  %v1172_v26 = vunpack.c.l.bf16 %v726_v48 }
  0xf3   : > { %1509 = vmatprep.subr.mxu0 %v987_v52  ;;  %1579 = vmatpush2.msra.mxu1 %v1250_v6  ;;  %v601_v40 = vld [vmem:[%s2615_s30 + $0x208] sm:$0xff]  ;;  %v1187_v50 = vunpack.c.h.bf16 %v733_v0  ;;  %v1186_v25 = vunpack.c.l.bf16 %v733_v0  ;;  %v590_v52 = vld [vmem:[%s2615_s30 + $0x1b0] sm:$0xff]  ;;  %v1165_v57 = vunpack.c.h.bf16 %v722_v46  ;;  %v908_v18 = vunpack.c.l.bf16 %v594_v29 }
  0xf4   : > { %1510 = vmatpush2.msra.mxu0 %v986_v16  ;;  %1580 = vmatprep.subr.mxu1 %v1243_v63  ;;  %v729_v14 = vld [vmem:[%s2615_s30 + $0x608] sm:$0xff]  ;;  %v923_v43 = vunpack.c.h.bf16 %v601_v40  ;;  %v922_v10 = vunpack.c.l.bf16 %v601_v40  ;;  %v718_v6 = vld [vmem:[%s2615_s30 + $0x5b0] sm:$0xff]  ;;  %v909_v16 = vunpack.c.h.bf16 %v594_v29  ;;  %v1164_v63 = vunpack.c.l.bf16 %v722_v46 }
  0xf5   : > { %1511 = vmatprep.subr.mxu0 %v979_v7  ;;  %1581 = vmatpush2.msra.mxu1 %v1242_v17  ;;  %v1179_v11 = vunpack.c.h.bf16 %v729_v14  ;;  %v1178_v28 = vunpack.c.l.bf16 %v729_v14  ;;  %v586_v7 = vld [vmem:[%s2615_s30 + $0x190] sm:$0xff]  ;;  %v1157_v33 = vunpack.c.h.bf16 %v718_v6  ;;  %v900_v59 = vunpack.c.l.bf16 %v590_v52 }
  0xf6   : > { %1512 = vmatpush2.msra.mxu0 %v978_v32  ;;  %1582 = vmatprep.subr.mxu1 %v1235_v54  ;;  %v714_v17 = vld [vmem:[%s2615_s30 + $0x590] sm:$0xff]  ;;  %v901_v32 = vunpack.c.h.bf16 %v590_v52  ;;  %v1156_v54 = vunpack.c.l.bf16 %v718_v6  ;;  %v892_v3 = vunpack.c.l.bf16 %v586_v7 }
  0xf7   : > { %1513 = vmatprep.subr.mxu0 %v971_v31  ;;  %1583 = vmatpush2.msra.mxu1 %v1234_v2  ;;  %v582_v31 = vld [vmem:[%s2615_s30 + $0x170] sm:$0xff]  ;;  %v1149_v55 = vunpack.c.h.bf16 %v714_v17 }
  0xf8   : > { %1514 = vmatpush2.msra.mxu0 %v970_v45  ;;  %1584 = vmatprep.subr.mxu1 %v1227_v12  ;;  %v710_v2 = vld [vmem:[%s2615_s30 + $0x570] sm:$0xff]  ;;  %v893_v45 = vunpack.c.h.bf16 %v586_v7  ;;  %v1148_v12 = vunpack.c.l.bf16 %v714_v17  ;;  %v884_v51 = vunpack.c.l.bf16 %v582_v31 }
  0xf9   : > { %1515 = vmatprep.subr.mxu0 %v963_v36  ;;  %1585 = vmatpush2.msra.mxu1 %v1226_v19  ;;  %v578_v36 = vld [vmem:[%s2615_s30 + $0x150] sm:$0xff]  ;;  %v1141_v15 = vunpack.c.h.bf16 %v710_v2 }
  0xfa   : > { %1516 = vmatpush2.msra.mxu0 %v962_v35  ;;  %1586 = vmatprep.subr.mxu1 %v1219_v24  ;;  %v706_v19 = vld [vmem:[%s2615_s30 + $0x550] sm:$0xff]  ;;  %v885_v35 = vunpack.c.h.bf16 %v582_v31  ;;  %v1140_v24 = vunpack.c.l.bf16 %v710_v2  ;;  %v876_v8 = vunpack.c.l.bf16 %v578_v36 }
  0xfb   : > { %1517 = vmatprep.subr.mxu0 %v955_v56  ;;  %1587 = vmatpush2.msra.mxu1 %v1218_v4  ;;  %v574_v56 = vld [vmem:[%s2615_s30 + $0x130] sm:$0xff]  ;;  %v1133_v20 = vunpack.c.h.bf16 %v706_v19 }
  0xfc   : > { %1518 = vmatpush2.msra.mxu0 %v954_v5  ;;  %1588 = vmatprep.subr.mxu1 %v1211_v22  ;;  %v702_v4 = vld [vmem:[%s2615_s30 + $0x530] sm:$0xff]  ;;  %v877_v5 = vunpack.c.h.bf16 %v578_v36  ;;  %v1132_v22 = vunpack.c.l.bf16 %v706_v19  ;;  %v868_v58 = vunpack.c.l.bf16 %v574_v56 }
  0xfd   : > { %1519 = vmatprep.subr.mxu0 %v947_v13  ;;  %1589 = vmatpush2.msra.mxu1 %v1210_v30  ;;  %v570_v13 = vld [vmem:[%s2615_s30 + $0x110] sm:$0xff]  ;;  %v1125_v34 = vunpack.c.h.bf16 %v702_v4 }
  0xfe   : > { %1520 = vmatpush2.msra.mxu0 %v946_v23  ;;  %1590 = vmatprep.subr.mxu1 %v1203_v38  ;;  %v698_v30 = vld [vmem:[%s2615_s30 + $0x510] sm:$0xff]  ;;  %v869_v23 = vunpack.c.h.bf16 %v574_v56  ;;  %v1124_v38 = vunpack.c.l.bf16 %v702_v4  ;;  %v860_v40 = vunpack.c.l.bf16 %v570_v13 }
  0xff   : > { %1521 = vmatprep.subr.mxu0 %v939_v44  ;;  %1591 = vmatpush2.msra.mxu1 %v1202_v37  ;;  %v566_v44 = vld [vmem:[%s2615_s30 + $0xf0] sm:$0xff]  ;;  %v1117_v0 = vunpack.c.h.bf16 %v698_v30 }
 0x100   : > { %1522 = vmatpush2.msra.mxu0 %v938_v9  ;;  %1592 = vmatprep.subr.mxu1 %v1195_v42  ;;  %v694_v37 = vld [vmem:[%s2615_s30 + $0x4f0] sm:$0xff]  ;;  %v861_v9 = vunpack.c.h.bf16 %v570_v13  ;;  %v1116_v42 = vunpack.c.l.bf16 %v698_v30 }
 0x101   : > { %1523 = vmatprep.subr.mxu0 %v931_v41  ;;  %1593 = vmatpush2.msra.mxu1 %v1194_v53  ;;  %v562_v41 = vld [vmem:[%s2615_s30 + $0xd0] sm:$0xff]  ;;  %v1109_v14 = vunpack.c.h.bf16 %v694_v37 }
 0x102   : > { %1524 = vmatpush2.msra.mxu0 %v930_v39  ;;  %1594 = vmatprep.subr.mxu1 %v1187_v50  ;;  %v690_v53 = vld [vmem:[%s2615_s30 + $0x4d0] sm:$0xff]  ;;  %v853_v39 = vunpack.c.h.bf16 %v566_v44  ;;  %v852_v50 = vunpack.c.l.bf16 %v566_v44  ;;  %v844_v48 = vunpack.c.l.bf16 %v562_v41 }
 0x103   : > { %1525 = vmatprep.subr.mxu0 %v923_v43  ;;  %1595 = vmatpush2.msra.mxu1 %v1186_v25  ;;  %v1108_v43 = vunpack.c.l.bf16 %v694_v37  ;;  %v558_v25 = vld [vmem:[%s2615_s30 + $0xb0] sm:$0xff]  ;;  %v1101_v27 = vunpack.c.h.bf16 %v690_v53 }
 0x104   : > { %1526 = vmatpush2.msra.mxu0 %v922_v10  ;;  %1596 = vmatprep.subr.mxu1 %v1179_v11  ;;  %v686_v10 = vld [vmem:[%s2615_s30 + $0x4b0] sm:$0xff]  ;;  %v845_v11 = vunpack.c.h.bf16 %v562_v41 }
 0x105   : > { %1527 = vmatprep.mubr.f32.mxu0 %v3075_v1  ;;  %1597 = vmatpush2.msra.mxu1 %v1178_v28  ;;  %v1100_v28 = vunpack.c.l.bf16 %v690_v53  ;;  %v554_v29 = vld [vmem:[%s2615_s30 + $0x90] sm:$0xff] }
 0x106   : > { %1598 = vmatprep.mubr.f32.mxu1 %v3079_v21  ;;  %1528 = vmatmul.mubr.f32.vlgmr.msra.gmra.mxu0 %v3082_v62  ;;  %v682_v46 = vld [vmem:[%s2615_s30 + $0x490] sm:$0xff] }
 0x107   : > { %1599 = vmatmul.mubr.f32.vlgmr.msra.gmra.mxu1 %v3092_v61  ;;  %1605 = vmatprep.subr.mxu0 %v917_v60  ;;  %v837_v60 = vunpack.c.h.bf16 %v558_v25  ;;  %v550_v52 = vld [vmem:[%s2615_s30 + $0x70] sm:$0xff] }
 0x108   : > { %1676 = vmatprep.subr.mxu1 %v1173_v49  ;;  %1606 = vmatpush1.msra.mxu0 %v916_v47  ;;  %v1093_v49 = vunpack.c.h.bf16 %v686_v10  ;;  %v836_v47 = vunpack.c.l.bf16 %v558_v25  ;;  %v678_v6 = vld [vmem:[%s2615_s30 + $0x470] sm:$0xff] }
 0x109   : > { %1677 = vmatpush1.msra.mxu1 %v1172_v26  ;;  %1607 = vmatprep.subr.mxu0 %v909_v16  ;;  %v1092_v26 = vunpack.c.l.bf16 %v686_v10  ;;  %v829_v16 = vunpack.c.h.bf16 %v554_v29  ;;  %v546_v7 = vld [vmem:[%s2615_s30 + $0x50] sm:$0xff] }
 0x10a   : > { %1678 = vmatprep.subr.mxu1 %v1165_v57  ;;  %1608 = vmatpush1.msra.mxu0 %v908_v18  ;;  %v1085_v57 = vunpack.c.h.bf16 %v682_v46  ;;  %v828_v18 = vunpack.c.l.bf16 %v554_v29  ;;  %v674_v17 = vld [vmem:[%s2615_s30 + $0x450] sm:$0xff] }
 0x10b   : > { %1679 = vmatpush1.msra.mxu1 %v1164_v63  ;;  %1609 = vmatprep.subr.mxu0 %v901_v32  ;;  %v1084_v63 = vunpack.c.l.bf16 %v682_v46  ;;  %v821_v32 = vunpack.c.h.bf16 %v550_v52  ;;  %v542_v31 = vld [vmem:[%s2615_s30 + $0x30] sm:$0xff] }
 0x10c   : > { %1680 = vmatprep.subr.mxu1 %v1157_v33  ;;  %1610 = vmatpush1.msra.mxu0 %v900_v59  ;;  %v1077_v33 = vunpack.c.h.bf16 %v678_v6  ;;  %v820_v59 = vunpack.c.l.bf16 %v550_v52  ;;  %v670_v2 = vld [vmem:[%s2615_s30 + $0x430] sm:$0xff] }
 0x10d   : > { %1681 = vmatpush1.msra.mxu1 %v1156_v54  ;;  %1611 = vmatprep.subr.mxu0 %v893_v45  ;;  %v1076_v54 = vunpack.c.l.bf16 %v678_v6  ;;  %v813_v45 = vunpack.c.h.bf16 %v546_v7  ;;  %v538_v36 = vld [vmem:[%s2615_s30 + $0x10] sm:$0xff] }
 0x10e   : > { %1682 = vmatprep.subr.mxu1 %v1149_v55  ;;  %1612 = vmatpush1.msra.mxu0 %v892_v3  ;;  %v1069_v55 = vunpack.c.h.bf16 %v674_v17  ;;  %v812_v3 = vunpack.c.l.bf16 %v546_v7  ;;  %v666_v19 = vld [vmem:[%s2615_s30 + $0x410] sm:$0xff] }
 0x10f   : > { %1683 = vmatpush1.msra.mxu1 %v1148_v12  ;;  %1613 = vmatprep.subr.mxu0 %v885_v35  ;;  %v1068_v12 = vunpack.c.l.bf16 %v674_v17  ;;  %v805_v35 = vunpack.c.h.bf16 %v542_v31  ;;  %v662_v56 = vld [vmem:[%s2615_s30 + $0x3f0] sm:$0xff] }
 0x110   : > { %1684 = vmatprep.subr.mxu1 %v1141_v15  ;;  %1614 = vmatpush1.msra.mxu0 %v884_v51  ;;  %v1061_v15 = vunpack.c.h.bf16 %v670_v2  ;;  %v804_v51 = vunpack.c.l.bf16 %v542_v31  ;;  %v790_v4 = vld [vmem:[%s2615_s30 + $0x7f0] sm:$0xff] }
 0x111   : > { %1685 = vmatpush1.msra.mxu1 %v1140_v24  ;;  %1615 = vmatprep.subr.mxu0 %v877_v5  ;;  %v1060_v24 = vunpack.c.l.bf16 %v670_v2  ;;  %v797_v5 = vunpack.c.h.bf16 %v538_v36  ;;  %v658_v13 = vld [vmem:[%s2615_s30 + $0x3d0] sm:$0xff] }
 0x112   : > { %1686 = vmatprep.subr.mxu1 %v1133_v20  ;;  %1616 = vmatpush1.msra.mxu0 %v876_v8  ;;  %v1053_v20 = vunpack.c.h.bf16 %v666_v19  ;;  %v796_v8 = vunpack.c.l.bf16 %v538_v36  ;;  %v786_v30 = vld [vmem:[%s2615_s30 + $0x7d0] sm:$0xff] }
 0x113   : > { %1687 = vmatpush1.msra.mxu1 %v1132_v22  ;;  %1617 = vmatprep.subr.mxu0 %v869_v23  ;;  %v1052_v22 = vunpack.c.l.bf16 %v666_v19  ;;  %v1045_v23 = vunpack.c.h.bf16 %v662_v56  ;;  %v654_v44 = vld [vmem:[%s2615_s30 + $0x3b0] sm:$0xff] }
 0x114   : > { %1688 = vmatprep.subr.mxu1 %v1125_v34  ;;  %1618 = vmatpush1.msra.mxu0 %v868_v58  ;;  %v1301_v34 = vunpack.c.h.bf16 %v790_v4  ;;  %v1044_v58 = vunpack.c.l.bf16 %v662_v56  ;;  %v782_v37 = vld [vmem:[%s2615_s30 + $0x7b0] sm:$0xff] }
 0x115   : > { %1689 = vmatpush1.msra.mxu1 %v1124_v38  ;;  %1619 = vmatprep.subr.mxu0 %v861_v9  ;;  %v1300_v38 = vunpack.c.l.bf16 %v790_v4  ;;  %v1037_v9 = vunpack.c.h.bf16 %v658_v13  ;;  %v650_v41 = vld [vmem:[%s2615_s30 + $0x390] sm:$0xff] }
 0x116   : > { %1690 = vmatprep.subr.mxu1 %v1117_v0  ;;  %1620 = vmatpush1.msra.mxu0 %v860_v40  ;;  %v1293_v0 = vunpack.c.h.bf16 %v786_v30  ;;  %v1036_v40 = vunpack.c.l.bf16 %v658_v13  ;;  %v778_v53 = vld [vmem:[%s2615_s30 + $0x790] sm:$0xff] }
 0x117   : > { %1691 = vmatpush1.msra.mxu1 %v1116_v42  ;;  %1621 = vmatprep.subr.mxu0 %v853_v39  ;;  %v1292_v42 = vunpack.c.l.bf16 %v786_v30  ;;  %v1029_v39 = vunpack.c.h.bf16 %v654_v44  ;;  %v646_v25 = vld [vmem:[%s2615_s30 + $0x370] sm:$0xff] }
 0x118   : > { %1692 = vmatprep.subr.mxu1 %v1109_v14  ;;  %1622 = vmatpush1.msra.mxu0 %v852_v50  ;;  %v1285_v14 = vunpack.c.h.bf16 %v782_v37  ;;  %v1028_v50 = vunpack.c.l.bf16 %v654_v44  ;;  %v774_v10 = vld [vmem:[%s2615_s30 + $0x770] sm:$0xff] }
 0x119   : > { %1693 = vmatpush1.msra.mxu1 %v1108_v43  ;;  %1623 = vmatprep.subr.mxu0 %v845_v11  ;;  %v1284_v43 = vunpack.c.l.bf16 %v782_v37  ;;  %v1021_v11 = vunpack.c.h.bf16 %v650_v41  ;;  %v642_v29 = vld [vmem:[%s2615_s30 + $0x350] sm:$0xff] }
 0x11a   : > { %1694 = vmatprep.subr.mxu1 %v1101_v27  ;;  %1624 = vmatpush1.msra.mxu0 %v844_v48  ;;  %v1277_v27 = vunpack.c.h.bf16 %v778_v53  ;;  %v1020_v48 = vunpack.c.l.bf16 %v650_v41  ;;  %v770_v46 = vld [vmem:[%s2615_s30 + $0x750] sm:$0xff] }
 0x11b   : > { %1695 = vmatpush1.msra.mxu1 %v1100_v28  ;;  %1625 = vmatprep.subr.mxu0 %v837_v60  ;;  %v1276_v28 = vunpack.c.l.bf16 %v778_v53  ;;  %v1013_v60 = vunpack.c.h.bf16 %v646_v25  ;;  %v638_v52 = vld [vmem:[%s2615_s30 + $0x330] sm:$0xff] }
 0x11c   : > { %1696 = vmatprep.subr.mxu1 %v1093_v49  ;;  %1626 = vmatpush1.msra.mxu0 %v836_v47  ;;  %v1269_v49 = vunpack.c.h.bf16 %v774_v10  ;;  %v1012_v47 = vunpack.c.l.bf16 %v646_v25  ;;  %v766_v6 = vld [vmem:[%s2615_s30 + $0x730] sm:$0xff] }
 0x11d   : > { %1697 = vmatpush1.msra.mxu1 %v1092_v26  ;;  %1627 = vmatprep.subr.mxu0 %v829_v16  ;;  %v1268_v26 = vunpack.c.l.bf16 %v774_v10  ;;  %v1005_v16 = vunpack.c.h.bf16 %v642_v29  ;;  %v634_v7 = vld [vmem:[%s2615_s30 + $0x310] sm:$0xff] }
 0x11e   : > { %1698 = vmatprep.subr.mxu1 %v1085_v57  ;;  %1628 = vmatpush1.msra.mxu0 %v828_v18  ;;  %v1261_v57 = vunpack.c.h.bf16 %v770_v46  ;;  %v1004_v18 = vunpack.c.l.bf16 %v642_v29  ;;  %v762_v17 = vld [vmem:[%s2615_s30 + $0x710] sm:$0xff] }
 0x11f   : > { %1699 = vmatpush1.msra.mxu1 %v1084_v63  ;;  %1629 = vmatprep.subr.mxu0 %v821_v32  ;;  %v1260_v63 = vunpack.c.l.bf16 %v770_v46  ;;  %v997_v32 = vunpack.c.h.bf16 %v638_v52  ;;  %v630_v31 = vld [vmem:[%s2615_s30 + $0x2f0] sm:$0xff] }
 0x120   : > { %1700 = vmatprep.subr.mxu1 %v1077_v33  ;;  %1630 = vmatpush1.msra.mxu0 %v820_v59  ;;  %v1253_v33 = vunpack.c.h.bf16 %v766_v6  ;;  %v996_v59 = vunpack.c.l.bf16 %v638_v52  ;;  %v758_v2 = vld [vmem:[%s2615_s30 + $0x6f0] sm:$0xff] }
 0x121   : > { %1701 = vmatpush1.msra.mxu1 %v1076_v54  ;;  %1631 = vmatprep.subr.mxu0 %v813_v45  ;;  %v1252_v54 = vunpack.c.l.bf16 %v766_v6  ;;  %v989_v45 = vunpack.c.h.bf16 %v634_v7  ;;  %v626_v36 = vld [vmem:[%s2615_s30 + $0x2d0] sm:$0xff] }
 0x122   : > { %1702 = vmatprep.subr.mxu1 %v1069_v55  ;;  %1632 = vmatpush1.msra.mxu0 %v812_v3  ;;  %v1245_v55 = vunpack.c.h.bf16 %v762_v17  ;;  %v988_v3 = vunpack.c.l.bf16 %v634_v7  ;;  %v754_v19 = vld [vmem:[%s2615_s30 + $0x6d0] sm:$0xff]  ;;  %v595_v7 = vld [vmem:[%s2615_s30 + $0x1d8] sm:$0xff] }
 0x123   : > { %1703 = vmatpush1.msra.mxu1 %v1068_v12  ;;  %1633 = vmatprep.subr.mxu0 %v805_v35  ;;  %v1244_v12 = vunpack.c.l.bf16 %v762_v17  ;;  %v981_v35 = vunpack.c.h.bf16 %v630_v31  ;;  %v622_v56 = vld [vmem:[%s2615_s30 + $0x2b0] sm:$0xff]  ;;  %v723_v17 = vld [vmem:[%s2615_s30 + $0x5d8] sm:$0xff] }
 0x124   : > { %1704 = vmatprep.subr.mxu1 %v1061_v15  ;;  %1634 = vmatpush1.msra.mxu0 %v804_v51  ;;  %v1237_v15 = vunpack.c.h.bf16 %v758_v2  ;;  %v980_v51 = vunpack.c.l.bf16 %v630_v31  ;;  %v750_v4 = vld [vmem:[%s2615_s30 + $0x6b0] sm:$0xff]  ;;  %v591_v31 = vld [vmem:[%s2615_s30 + $0x1b8] sm:$0xff] }
 0x125   : > { %1705 = vmatpush1.msra.mxu1 %v1060_v24  ;;  %1635 = vmatprep.subr.mxu0 %v797_v5  ;;  %v1236_v24 = vunpack.c.l.bf16 %v758_v2  ;;  %v973_v5 = vunpack.c.h.bf16 %v626_v36  ;;  %v618_v13 = vld [vmem:[%s2615_s30 + $0x290] sm:$0xff]  ;;  %v719_v2 = vld [vmem:[%s2615_s30 + $0x5b8] sm:$0xff] }
 0x126   : > { %1706 = vmatprep.subr.mxu1 %v1053_v20  ;;  %1636 = vmatpush1.msra.mxu0 %v796_v8  ;;  %v1229_v20 = vunpack.c.h.bf16 %v754_v19  ;;  %v972_v8 = vunpack.c.l.bf16 %v626_v36  ;;  %v746_v30 = vld [vmem:[%s2615_s30 + $0x690] sm:$0xff]  ;;  %v587_v36 = vld [vmem:[%s2615_s30 + $0x198] sm:$0xff] }
 0x127   : > { %1707 = vmatpush1.msra.mxu1 %v1052_v22  ;;  %1637 = vmatprep.subr.mxu0 %v1045_v23  ;;  %v1228_v22 = vunpack.c.l.bf16 %v754_v19  ;;  %v965_v23 = vunpack.c.h.bf16 %v622_v56  ;;  %v614_v44 = vld [vmem:[%s2615_s30 + $0x270] sm:$0xff]  ;;  %v715_v19 = vld [vmem:[%s2615_s30 + $0x598] sm:$0xff] }
 0x128   : > { %1708 = vmatprep.subr.mxu1 %v1301_v34  ;;  %1638 = vmatpush2.msra.mxu0 %v1044_v58  ;;  %v1221_v34 = vunpack.c.h.bf16 %v750_v4  ;;  %v964_v58 = vunpack.c.l.bf16 %v622_v56  ;;  %v742_v37 = vld [vmem:[%s2615_s30 + $0x670] sm:$0xff]  ;;  %v583_v56 = vld [vmem:[%s2615_s30 + $0x178] sm:$0xff] }
 0x129   : > { %1709 = vmatpush2.msra.mxu1 %v1300_v38  ;;  %1639 = vmatprep.subr.mxu0 %v1037_v9  ;;  %v1220_v38 = vunpack.c.l.bf16 %v750_v4  ;;  %v957_v9 = vunpack.c.h.bf16 %v618_v13  ;;  %v610_v41 = vld [vmem:[%s2615_s30 + $0x250] sm:$0xff]  ;;  %v711_v4 = vld [vmem:[%s2615_s30 + $0x578] sm:$0xff] }
 0x12a   : > { %1710 = vmatprep.subr.mxu1 %v1293_v0  ;;  %1640 = vmatpush2.msra.mxu0 %v1036_v40  ;;  %v1213_v0 = vunpack.c.h.bf16 %v746_v30  ;;  %v956_v40 = vunpack.c.l.bf16 %v618_v13  ;;  %v738_v53 = vld [vmem:[%s2615_s30 + $0x650] sm:$0xff]  ;;  %v579_v13 = vld [vmem:[%s2615_s30 + $0x158] sm:$0xff] }
 0x12b   : > { %1711 = vmatpush2.msra.mxu1 %v1292_v42  ;;  %1641 = vmatprep.subr.mxu0 %v1029_v39  ;;  %v1212_v42 = vunpack.c.l.bf16 %v746_v30  ;;  %v949_v39 = vunpack.c.h.bf16 %v614_v44  ;;  %v606_v25 = vld [vmem:[%s2615_s30 + $0x230] sm:$0xff]  ;;  %v707_v30 = vld [vmem:[%s2615_s30 + $0x558] sm:$0xff] }
 0x12c   : > { %1712 = vmatprep.subr.mxu1 %v1285_v14  ;;  %1642 = vmatpush2.msra.mxu0 %v1028_v50  ;;  %v1205_v14 = vunpack.c.h.bf16 %v742_v37  ;;  %v948_v50 = vunpack.c.l.bf16 %v614_v44  ;;  %v734_v10 = vld [vmem:[%s2615_s30 + $0x630] sm:$0xff]  ;;  %v575_v44 = vld [vmem:[%s2615_s30 + $0x138] sm:$0xff] }
 0x12d   : > { %1713 = vmatpush2.msra.mxu1 %v1284_v43  ;;  %1643 = vmatprep.subr.mxu0 %v1021_v11  ;;  %v1204_v43 = vunpack.c.l.bf16 %v742_v37  ;;  %v941_v11 = vunpack.c.h.bf16 %v610_v41  ;;  %v602_v29 = vld [vmem:[%s2615_s30 + $0x210] sm:$0xff]  ;;  %v703_v37 = vld [vmem:[%s2615_s30 + $0x538] sm:$0xff] }
 0x12e   : > { %1714 = vmatprep.subr.mxu1 %v1277_v27  ;;  %1644 = vmatpush2.msra.mxu0 %v1020_v48  ;;  %v1197_v27 = vunpack.c.h.bf16 %v738_v53  ;;  %v940_v48 = vunpack.c.l.bf16 %v610_v41  ;;  %v730_v46 = vld [vmem:[%s2615_s30 + $0x610] sm:$0xff]  ;;  %v925_v52 = vunpack.c.h.bf16 %v602_v29  ;;  %v571_v41 = vld [vmem:[%s2615_s30 + $0x118] sm:$0xff] }
 0x12f   : > { %1715 = vmatpush2.msra.mxu1 %v1276_v28  ;;  %1645 = vmatprep.subr.mxu0 %v1013_v60  ;;  %v1196_v28 = vunpack.c.l.bf16 %v738_v53  ;;  %v933_v60 = vunpack.c.h.bf16 %v606_v25  ;;  %v1181_v6 = vunpack.c.h.bf16 %v730_v46  ;;  %v699_v53 = vld [vmem:[%s2615_s30 + $0x518] sm:$0xff] }
 0x130   : > { %1716 = vmatprep.subr.mxu1 %v1269_v49  ;;  %1646 = vmatpush2.msra.mxu0 %v1012_v47  ;;  %v1189_v49 = vunpack.c.h.bf16 %v734_v10  ;;  %v932_v47 = vunpack.c.l.bf16 %v606_v25  ;;  %v567_v25 = vld [vmem:[%s2615_s30 + $0xf8] sm:$0xff] }
 0x131   : > { %1717 = vmatpush2.msra.mxu1 %v1268_v26  ;;  %1647 = vmatprep.subr.mxu0 %v1005_v16  ;;  %v1188_v26 = vunpack.c.l.bf16 %v734_v10  ;;  %v924_v16 = vunpack.c.l.bf16 %v602_v29  ;;  %v695_v10 = vld [vmem:[%s2615_s30 + $0x4f8] sm:$0xff] }
 0x132   : > { %1718 = vmatprep.subr.mxu1 %v1261_v57  ;;  %1648 = vmatpush2.msra.mxu0 %v1004_v18  ;;  %v599_v57 = vld [vmem:[%s2615_s30 + $0x1f8] sm:$0xff] }
 0x133   : > { %1719 = vmatpush2.msra.mxu1 %v1260_v63  ;;  %1649 = vmatprep.subr.mxu0 %v997_v32  ;;  %v727_v18 = vld [vmem:[%s2615_s30 + $0x5f8] sm:$0xff]  ;;  %v1180_v63 = vunpack.c.l.bf16 %v730_v46  ;;  %v919_v32 = vunpack.c.h.bf16 %v599_v57 }
 0x134   : > { %1720 = vmatprep.subr.mxu1 %v1253_v33  ;;  %1650 = vmatpush2.msra.mxu0 %v996_v59  ;;  %v1175_v33 = vunpack.c.h.bf16 %v727_v18  ;;  %v918_v59 = vunpack.c.l.bf16 %v599_v57  ;;  %v563_v29 = vld [vmem:[%s2615_s30 + $0xd8] sm:$0xff] }
 0x135   : > { %1721 = vmatpush2.msra.mxu1 %v1252_v54  ;;  %1651 = vmatprep.subr.mxu0 %v989_v45  ;;  %v1174_v54 = vunpack.c.l.bf16 %v727_v18  ;;  %v911_v45 = vunpack.c.h.bf16 %v595_v7  ;;  %v691_v46 = vld [vmem:[%s2615_s30 + $0x4d8] sm:$0xff]  ;;  %v846_v18 = vunpack.c.l.bf16 %v563_v29 }
 0x136   : > { %1722 = vmatprep.subr.mxu1 %v1245_v55  ;;  %1652 = vmatpush2.msra.mxu0 %v988_v3  ;;  %v1167_v55 = vunpack.c.h.bf16 %v723_v17  ;;  %v910_v3 = vunpack.c.l.bf16 %v595_v7  ;;  %v1103_v57 = vunpack.c.h.bf16 %v691_v46  ;;  %v555_v7 = vld [vmem:[%s2615_s30 + $0x98] sm:$0xff] }
 0x137   : > { %1723 = vmatpush2.msra.mxu1 %v1244_v12  ;;  %1653 = vmatprep.subr.mxu0 %v981_v35  ;;  %v1166_v12 = vunpack.c.l.bf16 %v723_v17  ;;  %v903_v35 = vunpack.c.h.bf16 %v591_v31  ;;  %v683_v17 = vld [vmem:[%s2615_s30 + $0x498] sm:$0xff] }
 0x138   : > { %1724 = vmatprep.subr.mxu1 %v1237_v15  ;;  %1654 = vmatpush2.msra.mxu0 %v980_v51  ;;  %v1159_v15 = vunpack.c.h.bf16 %v719_v2  ;;  %v902_v51 = vunpack.c.l.bf16 %v591_v31  ;;  %v551_v31 = vld [vmem:[%s2615_s30 + $0x78] sm:$0xff] }
 0x139   : > { %1725 = vmatpush2.msra.mxu1 %v1236_v24  ;;  %1655 = vmatprep.subr.mxu0 %v973_v5  ;;  %v1158_v24 = vunpack.c.l.bf16 %v719_v2  ;;  %v895_v5 = vunpack.c.h.bf16 %v587_v36  ;;  %v679_v2 = vld [vmem:[%s2615_s30 + $0x478] sm:$0xff] }
 0x13a   : > { %1726 = vmatprep.subr.mxu1 %v1229_v20  ;;  %1656 = vmatpush2.msra.mxu0 %v972_v8  ;;  %v1151_v20 = vunpack.c.h.bf16 %v715_v19  ;;  %v894_v8 = vunpack.c.l.bf16 %v587_v36  ;;  %v547_v36 = vld [vmem:[%s2615_s30 + $0x58] sm:$0xff] }
 0x13b   : > { %1727 = vmatpush2.msra.mxu1 %v1228_v22  ;;  %1657 = vmatprep.subr.mxu0 %v965_v23  ;;  %v1150_v22 = vunpack.c.l.bf16 %v715_v19  ;;  %v887_v23 = vunpack.c.h.bf16 %v583_v56  ;;  %v675_v19 = vld [vmem:[%s2615_s30 + $0x458] sm:$0xff] }
 0x13c   : > { %1728 = vmatprep.subr.mxu1 %v1221_v34  ;;  %1658 = vmatpush2.msra.mxu0 %v964_v58  ;;  %v1143_v34 = vunpack.c.h.bf16 %v711_v4  ;;  %v886_v58 = vunpack.c.l.bf16 %v583_v56  ;;  %v543_v56 = vld [vmem:[%s2615_s30 + $0x38] sm:$0xff] }
 0x13d   : > { %1729 = vmatpush2.msra.mxu1 %v1220_v38  ;;  %1659 = vmatprep.subr.mxu0 %v957_v9  ;;  %v1142_v38 = vunpack.c.l.bf16 %v711_v4  ;;  %v879_v9 = vunpack.c.h.bf16 %v579_v13  ;;  %v671_v4 = vld [vmem:[%s2615_s30 + $0x438] sm:$0xff] }
 0x13e   : > { %1730 = vmatprep.subr.mxu1 %v1213_v0  ;;  %1660 = vmatpush2.msra.mxu0 %v956_v40  ;;  %v1135_v0 = vunpack.c.h.bf16 %v707_v30  ;;  %v878_v40 = vunpack.c.l.bf16 %v579_v13  ;;  %v539_v13 = vld [vmem:[%s2615_s30 + $0x18] sm:$0xff] }
 0x13f   : > { %1731 = vmatpush2.msra.mxu1 %v1212_v42  ;;  %1661 = vmatprep.subr.mxu0 %v949_v39  ;;  %v1134_v42 = vunpack.c.l.bf16 %v707_v30  ;;  %v871_v39 = vunpack.c.h.bf16 %v575_v44  ;;  %v667_v30 = vld [vmem:[%s2615_s30 + $0x418] sm:$0xff] }
 0x140   : > { %1732 = vmatprep.subr.mxu1 %v1205_v14  ;;  %1662 = vmatpush2.msra.mxu0 %v948_v50  ;;  %v1127_v14 = vunpack.c.h.bf16 %v703_v37  ;;  %v870_v50 = vunpack.c.l.bf16 %v575_v44  ;;  %v663_v44 = vld [vmem:[%s2615_s30 + $0x3f8] sm:$0xff] }
 0x141   : > { %1733 = vmatpush2.msra.mxu1 %v1204_v43  ;;  %1663 = vmatprep.subr.mxu0 %v941_v11  ;;  %v1126_v43 = vunpack.c.l.bf16 %v703_v37  ;;  %v863_v11 = vunpack.c.h.bf16 %v571_v41  ;;  %v791_v37 = vld [vmem:[%s2615_s30 + $0x7f8] sm:$0xff] }
 0x142   : > { %1734 = vmatprep.subr.mxu1 %v1197_v27  ;;  %1664 = vmatpush2.msra.mxu0 %v940_v48  ;;  %v1119_v27 = vunpack.c.h.bf16 %v699_v53  ;;  %v862_v48 = vunpack.c.l.bf16 %v571_v41  ;;  %v659_v41 = vld [vmem:[%s2615_s30 + $0x3d8] sm:$0xff] }
 0x143   : > { %1735 = vmatpush2.msra.mxu1 %v1196_v28  ;;  %1665 = vmatprep.subr.mxu0 %v933_v60  ;;  %v1118_v28 = vunpack.c.l.bf16 %v699_v53  ;;  %v855_v60 = vunpack.c.h.bf16 %v567_v25  ;;  %v787_v53 = vld [vmem:[%s2615_s30 + $0x7d8] sm:$0xff] }
 0x144   : > { %1736 = vmatprep.subr.mxu1 %v1189_v49  ;;  %1666 = vmatpush2.msra.mxu0 %v932_v47  ;;  %v1111_v49 = vunpack.c.h.bf16 %v695_v10  ;;  %v854_v47 = vunpack.c.l.bf16 %v567_v25  ;;  %v655_v25 = vld [vmem:[%s2615_s30 + $0x3b8] sm:$0xff] }
 0x145   : > { %1737 = vmatpush2.msra.mxu1 %v1188_v26  ;;  %1667 = vmatprep.subr.mxu0 %v925_v52  ;;  %v1110_v26 = vunpack.c.l.bf16 %v695_v10  ;;  %v559_v52 = vld [vmem:[%s2615_s30 + $0xb8] sm:$0xff] }
 0x146   : > { %1738 = vmatprep.subr.mxu1 %v1181_v6  ;;  %1668 = vmatpush2.msra.mxu0 %v924_v16  ;;  %v687_v6 = vld [vmem:[%s2615_s30 + $0x4b8] sm:$0xff]  ;;  %v847_v16 = vunpack.c.h.bf16 %v563_v29 }
 0x147   : > { %1669 = vmatprep.mubr.f32.mxu0 %v3075_v1  ;;  %1739 = vmatpush2.msra.mxu1 %v1180_v63  ;;  %v1102_v63 = vunpack.c.l.bf16 %v691_v46  ;;  %v783_v10 = vld [vmem:[%s2615_s30 + $0x7b8] sm:$0xff] }
 0x148   : > { %1740 = vmatprep.mubr.f32.mxu1 %v3079_v21  ;;  %1670 = vmatmul.mubr.f32.vlgmr.msra.gmra.mxu0 %v3082_v62  ;;  %v651_v29 = vld [vmem:[%s2615_s30 + $0x398] sm:$0xff] }
 0x149   : > { %1741 = vmatmul.mubr.f32.vlgmr.msra.gmra.mxu1 %v3092_v61  ;;  %1747 = vmatprep.subr.mxu0 %v919_v32  ;;  %v839_v32 = vunpack.c.h.bf16 %v559_v52  ;;  %v779_v46 = vld [vmem:[%s2615_s30 + $0x798] sm:$0xff] }
 0x14a   : > { %1818 = vmatprep.subr.mxu1 %v1175_v33  ;;  %1748 = vmatpush1.msra.mxu0 %v918_v59  ;;  %v1095_v33 = vunpack.c.h.bf16 %v687_v6  ;;  %v838_v59 = vunpack.c.l.bf16 %v559_v52  ;;  %v647_v52 = vld [vmem:[%s2615_s30 + $0x378] sm:$0xff] }
 0x14b   : > { %1819 = vmatpush1.msra.mxu1 %v1174_v54  ;;  %1749 = vmatprep.subr.mxu0 %v911_v45  ;;  %v1094_v54 = vunpack.c.l.bf16 %v687_v6  ;;  %v831_v45 = vunpack.c.h.bf16 %v555_v7  ;;  %v775_v6 = vld [vmem:[%s2615_s30 + $0x778] sm:$0xff] }
 0x14c   : > { %1820 = vmatprep.subr.mxu1 %v1167_v55  ;;  %1750 = vmatpush1.msra.mxu0 %v910_v3  ;;  %v1087_v55 = vunpack.c.h.bf16 %v683_v17  ;;  %v830_v3 = vunpack.c.l.bf16 %v555_v7  ;;  %v643_v7 = vld [vmem:[%s2615_s30 + $0x358] sm:$0xff] }
 0x14d   : > { %1821 = vmatpush1.msra.mxu1 %v1166_v12  ;;  %1751 = vmatprep.subr.mxu0 %v903_v35  ;;  %v1086_v12 = vunpack.c.l.bf16 %v683_v17  ;;  %v823_v35 = vunpack.c.h.bf16 %v551_v31  ;;  %v771_v17 = vld [vmem:[%s2615_s30 + $0x758] sm:$0xff] }
 0x14e   : > { %1822 = vmatprep.subr.mxu1 %v1159_v15  ;;  %1752 = vmatpush1.msra.mxu0 %v902_v51  ;;  %v1079_v15 = vunpack.c.h.bf16 %v679_v2  ;;  %v822_v51 = vunpack.c.l.bf16 %v551_v31  ;;  %v639_v31 = vld [vmem:[%s2615_s30 + $0x338] sm:$0xff] }
 0x14f   : > { %1823 = vmatpush1.msra.mxu1 %v1158_v24  ;;  %1753 = vmatprep.subr.mxu0 %v895_v5  ;;  %v1078_v24 = vunpack.c.l.bf16 %v679_v2  ;;  %v815_v5 = vunpack.c.h.bf16 %v547_v36  ;;  %v767_v2 = vld [vmem:[%s2615_s30 + $0x738] sm:$0xff] }
 0x150   : > { %1824 = vmatprep.subr.mxu1 %v1151_v20  ;;  %1754 = vmatpush1.msra.mxu0 %v894_v8  ;;  %v1071_v20 = vunpack.c.h.bf16 %v675_v19  ;;  %v814_v8 = vunpack.c.l.bf16 %v547_v36  ;;  %v635_v36 = vld [vmem:[%s2615_s30 + $0x318] sm:$0xff] }
 0x151   : > { %1825 = vmatpush1.msra.mxu1 %v1150_v22  ;;  %1755 = vmatprep.subr.mxu0 %v887_v23  ;;  %v1070_v22 = vunpack.c.l.bf16 %v675_v19  ;;  %v807_v23 = vunpack.c.h.bf16 %v543_v56  ;;  %v763_v19 = vld [vmem:[%s2615_s30 + $0x718] sm:$0xff] }
 0x152   : > { %1826 = vmatprep.subr.mxu1 %v1143_v34  ;;  %1756 = vmatpush1.msra.mxu0 %v886_v58  ;;  %v1063_v34 = vunpack.c.h.bf16 %v671_v4  ;;  %v806_v58 = vunpack.c.l.bf16 %v543_v56  ;;  %v631_v56 = vld [vmem:[%s2615_s30 + $0x2f8] sm:$0xff] }
 0x153   : > { %1827 = vmatpush1.msra.mxu1 %v1142_v38  ;;  %1757 = vmatprep.subr.mxu0 %v879_v9  ;;  %v1062_v38 = vunpack.c.l.bf16 %v671_v4  ;;  %v799_v9 = vunpack.c.h.bf16 %v539_v13  ;;  %v759_v4 = vld [vmem:[%s2615_s30 + $0x6f8] sm:$0xff] }
 0x154   : > { %1828 = vmatprep.subr.mxu1 %v1135_v0  ;;  %1758 = vmatpush1.msra.mxu0 %v878_v40  ;;  %v1055_v0 = vunpack.c.h.bf16 %v667_v30  ;;  %v798_v40 = vunpack.c.l.bf16 %v539_v13  ;;  %v627_v13 = vld [vmem:[%s2615_s30 + $0x2d8] sm:$0xff] }
 0x155   : > { %1829 = vmatpush1.msra.mxu1 %v1134_v42  ;;  %1759 = vmatprep.subr.mxu0 %v871_v39  ;;  %v1054_v42 = vunpack.c.l.bf16 %v667_v30  ;;  %v1047_v39 = vunpack.c.h.bf16 %v663_v44  ;;  %v755_v30 = vld [vmem:[%s2615_s30 + $0x6d8] sm:$0xff] }
 0x156   : > { %1830 = vmatprep.subr.mxu1 %v1127_v14  ;;  %1760 = vmatpush1.msra.mxu0 %v870_v50  ;;  %v1303_v14 = vunpack.c.h.bf16 %v791_v37  ;;  %v1046_v50 = vunpack.c.l.bf16 %v663_v44  ;;  %v623_v44 = vld [vmem:[%s2615_s30 + $0x2b8] sm:$0xff] }
 0x157   : > { %1831 = vmatpush1.msra.mxu1 %v1126_v43  ;;  %1761 = vmatprep.subr.mxu0 %v863_v11  ;;  %v1302_v43 = vunpack.c.l.bf16 %v791_v37  ;;  %v1039_v11 = vunpack.c.h.bf16 %v659_v41  ;;  %v751_v37 = vld [vmem:[%s2615_s30 + $0x6b8] sm:$0xff] }
 0x158   : > { %1832 = vmatprep.subr.mxu1 %v1119_v27  ;;  %1762 = vmatpush1.msra.mxu0 %v862_v48  ;;  %v1295_v27 = vunpack.c.h.bf16 %v787_v53  ;;  %v1038_v48 = vunpack.c.l.bf16 %v659_v41  ;;  %v619_v41 = vld [vmem:[%s2615_s30 + $0x298] sm:$0xff] }
 0x159   : > { %1833 = vmatpush1.msra.mxu1 %v1118_v28  ;;  %1763 = vmatprep.subr.mxu0 %v855_v60  ;;  %v1294_v28 = vunpack.c.l.bf16 %v787_v53  ;;  %v1031_v60 = vunpack.c.h.bf16 %v655_v25  ;;  %v747_v53 = vld [vmem:[%s2615_s30 + $0x698] sm:$0xff] }
 0x15a   : > { %1834 = vmatprep.subr.mxu1 %v1111_v49  ;;  %1764 = vmatpush1.msra.mxu0 %v854_v47  ;;  %v1287_v49 = vunpack.c.h.bf16 %v783_v10  ;;  %v1030_v47 = vunpack.c.l.bf16 %v655_v25  ;;  %v615_v25 = vld [vmem:[%s2615_s30 + $0x278] sm:$0xff] }
 0x15b   : > { %1835 = vmatpush1.msra.mxu1 %v1110_v26  ;;  %1765 = vmatprep.subr.mxu0 %v847_v16  ;;  %v1286_v26 = vunpack.c.l.bf16 %v783_v10  ;;  %v1023_v16 = vunpack.c.h.bf16 %v651_v29  ;;  %v743_v10 = vld [vmem:[%s2615_s30 + $0x678] sm:$0xff] }
 0x15c   : > { %1836 = vmatprep.subr.mxu1 %v1103_v57  ;;  %1766 = vmatpush1.msra.mxu0 %v846_v18  ;;  %v1279_v57 = vunpack.c.h.bf16 %v779_v46  ;;  %v1022_v18 = vunpack.c.l.bf16 %v651_v29  ;;  %v611_v29 = vld [vmem:[%s2615_s30 + $0x258] sm:$0xff] }
 0x15d   : > { %1837 = vmatpush1.msra.mxu1 %v1102_v63  ;;  %1767 = vmatprep.subr.mxu0 %v839_v32  ;;  %v1278_v63 = vunpack.c.l.bf16 %v779_v46  ;;  %v1015_v32 = vunpack.c.h.bf16 %v647_v52  ;;  %v739_v46 = vld [vmem:[%s2615_s30 + $0x658] sm:$0xff] }
 0x15e   : > { %1838 = vmatprep.subr.mxu1 %v1095_v33  ;;  %1768 = vmatpush1.msra.mxu0 %v838_v59  ;;  %v1271_v33 = vunpack.c.h.bf16 %v775_v6  ;;  %v1014_v59 = vunpack.c.l.bf16 %v647_v52  ;;  %v607_v52 = vld [vmem:[%s2615_s30 + $0x238] sm:$0xff] }
 0x15f   : > { %1839 = vmatpush1.msra.mxu1 %v1094_v54  ;;  %1769 = vmatprep.subr.mxu0 %v831_v45  ;;  %v1270_v54 = vunpack.c.l.bf16 %v775_v6  ;;  %v1007_v45 = vunpack.c.h.bf16 %v643_v7  ;;  %v735_v6 = vld [vmem:[%s2615_s30 + $0x638] sm:$0xff] }
 0x160   : > { %1840 = vmatprep.subr.mxu1 %v1087_v55  ;;  %1770 = vmatpush1.msra.mxu0 %v830_v3  ;;  %v1263_v55 = vunpack.c.h.bf16 %v771_v17  ;;  %v1006_v3 = vunpack.c.l.bf16 %v643_v7  ;;  %v603_v7 = vld [vmem:[%s2615_s30 + $0x218] sm:$0xff] }
 0x161   : > { %1841 = vmatpush1.msra.mxu1 %v1086_v12  ;;  %1771 = vmatprep.subr.mxu0 %v823_v35  ;;  %v1262_v12 = vunpack.c.l.bf16 %v771_v17  ;;  %v999_v35 = vunpack.c.h.bf16 %v639_v31  ;;  %v731_v17 = vld [vmem:[%s2615_s30 + $0x618] sm:$0xff] }
 0x162   : > { %1842 = vmatprep.subr.mxu1 %v1079_v15  ;;  %1772 = vmatpush1.msra.mxu0 %v822_v51  ;;  %v1255_v15 = vunpack.c.h.bf16 %v767_v2  ;;  %v998_v51 = vunpack.c.l.bf16 %v639_v31  ;;  %v927_v31 = vunpack.c.h.bf16 %v603_v7 }
 0x163   : > { %1843 = vmatpush1.msra.mxu1 %v1078_v24  ;;  %1773 = vmatprep.subr.mxu0 %v815_v5  ;;  %v1254_v24 = vunpack.c.l.bf16 %v767_v2  ;;  %v991_v5 = vunpack.c.h.bf16 %v635_v36  ;;  %v1183_v2 = vunpack.c.h.bf16 %v731_v17 }
 0x164   : > { %1844 = vmatprep.subr.mxu1 %v1071_v20  ;;  %1774 = vmatpush1.msra.mxu0 %v814_v8  ;;  %v1247_v20 = vunpack.c.h.bf16 %v763_v19  ;;  %v990_v8 = vunpack.c.l.bf16 %v635_v36 }
 0x165   : > { %1845 = vmatpush1.msra.mxu1 %v1070_v22  ;;  %1775 = vmatprep.subr.mxu0 %v807_v23  ;;  %v1246_v22 = vunpack.c.l.bf16 %v763_v19  ;;  %v983_v23 = vunpack.c.h.bf16 %v631_v56 }
 0x166   : > { %1846 = vmatprep.subr.mxu1 %v1063_v34  ;;  %1776 = vmatpush1.msra.mxu0 %v806_v58  ;;  %v1239_v34 = vunpack.c.h.bf16 %v759_v4  ;;  %v982_v58 = vunpack.c.l.bf16 %v631_v56 }
 0x167   : > { %1847 = vmatpush1.msra.mxu1 %v1062_v38  ;;  %1777 = vmatprep.subr.mxu0 %v799_v9  ;;  %v1238_v38 = vunpack.c.l.bf16 %v759_v4  ;;  %v975_v9 = vunpack.c.h.bf16 %v627_v13 }
 0x168   : > { %1848 = vmatprep.subr.mxu1 %v1055_v0  ;;  %1778 = vmatpush1.msra.mxu0 %v798_v40  ;;  %v1231_v0 = vunpack.c.h.bf16 %v755_v30  ;;  %v974_v40 = vunpack.c.l.bf16 %v627_v13 }
 0x169   : > { %1849 = vmatpush1.msra.mxu1 %v1054_v42  ;;  %1779 = vmatprep.subr.mxu0 %v1047_v39  ;;  %v1230_v42 = vunpack.c.l.bf16 %v755_v30  ;;  %v967_v39 = vunpack.c.h.bf16 %v623_v44 }
 0x16a   : > { %1850 = vmatprep.subr.mxu1 %v1303_v14  ;;  %1780 = vmatpush2.msra.mxu0 %v1046_v50  ;;  %v1223_v14 = vunpack.c.h.bf16 %v751_v37  ;;  %v966_v50 = vunpack.c.l.bf16 %v623_v44 }
 0x16b   : > { %1851 = vmatpush2.msra.mxu1 %v1302_v43  ;;  %1781 = vmatprep.subr.mxu0 %v1039_v11  ;;  %v1222_v43 = vunpack.c.l.bf16 %v751_v37  ;;  %v959_v11 = vunpack.c.h.bf16 %v619_v41 }
 0x16c   : > { %1852 = vmatprep.subr.mxu1 %v1295_v27  ;;  %1782 = vmatpush2.msra.mxu0 %v1038_v48  ;;  %v1215_v27 = vunpack.c.h.bf16 %v747_v53  ;;  %v958_v48 = vunpack.c.l.bf16 %v619_v41 }
 0x16d   : > { %1853 = vmatpush2.msra.mxu1 %v1294_v28  ;;  %1783 = vmatprep.subr.mxu0 %v1031_v60  ;;  %v1214_v28 = vunpack.c.l.bf16 %v747_v53  ;;  %v951_v60 = vunpack.c.h.bf16 %v615_v25 }
 0x16e   : > { %1854 = vmatprep.subr.mxu1 %v1287_v49  ;;  %1784 = vmatpush2.msra.mxu0 %v1030_v47  ;;  %v1207_v49 = vunpack.c.h.bf16 %v743_v10  ;;  %v950_v47 = vunpack.c.l.bf16 %v615_v25 }
 0x16f   : > { %1855 = vmatpush2.msra.mxu1 %v1286_v26  ;;  %1785 = vmatprep.subr.mxu0 %v1023_v16  ;;  %v1206_v26 = vunpack.c.l.bf16 %v743_v10  ;;  %v943_v16 = vunpack.c.h.bf16 %v611_v29 }
 0x170   : > { %1856 = vmatprep.subr.mxu1 %v1279_v57  ;;  %1786 = vmatpush2.msra.mxu0 %v1022_v18  ;;  %v1199_v57 = vunpack.c.h.bf16 %v739_v46  ;;  %v942_v18 = vunpack.c.l.bf16 %v611_v29 }
 0x171   : > { %1857 = vmatpush2.msra.mxu1 %v1278_v63  ;;  %1787 = vmatprep.subr.mxu0 %v1015_v32  ;;  %v1198_v63 = vunpack.c.l.bf16 %v739_v46  ;;  %v935_v32 = vunpack.c.h.bf16 %v607_v52 }
 0x172   : > { %1858 = vmatprep.subr.mxu1 %v1271_v33  ;;  %1788 = vmatpush2.msra.mxu0 %v1014_v59  ;;  %v1191_v33 = vunpack.c.h.bf16 %v735_v6  ;;  %v934_v59 = vunpack.c.l.bf16 %v607_v52 }
 0x173   : > { %1859 = vmatpush2.msra.mxu1 %v1270_v54  ;;  %1789 = vmatprep.subr.mxu0 %v1007_v45  ;;  %v1190_v54 = vunpack.c.l.bf16 %v735_v6  ;;  %v926_v45 = vunpack.c.l.bf16 %v603_v7 }
 0x174   : > { %1860 = vmatprep.subr.mxu1 %v1263_v55  ;;  %1790 = vmatpush2.msra.mxu0 %v1006_v3  ;;  %v1182_v3 = vunpack.c.l.bf16 %v731_v17 }
 0x175   : > { %1861 = vmatpush2.msra.mxu1 %v1262_v12  ;;  %1791 = vmatprep.subr.mxu0 %v999_v35 }
 0x176   : > { %1862 = vmatprep.subr.mxu1 %v1255_v15  ;;  %1792 = vmatpush2.msra.mxu0 %v998_v51 }
 0x177   : > { %1863 = vmatpush2.msra.mxu1 %v1254_v24  ;;  %1793 = vmatprep.subr.mxu0 %v991_v5 }
 0x178   : > { %1864 = vmatprep.subr.mxu1 %v1247_v20  ;;  %1794 = vmatpush2.msra.mxu0 %v990_v8 }
 0x179   : > { %1865 = vmatpush2.msra.mxu1 %v1246_v22  ;;  %1795 = vmatprep.subr.mxu0 %v983_v23 }
 0x17a   : > { %1866 = vmatprep.subr.mxu1 %v1239_v34  ;;  %1796 = vmatpush2.msra.mxu0 %v982_v58 }
 0x17b   : > { %1867 = vmatpush2.msra.mxu1 %v1238_v38  ;;  %1797 = vmatprep.subr.mxu0 %v975_v9 }
 0x17c   : > { %1868 = vmatprep.subr.mxu1 %v1231_v0  ;;  %1798 = vmatpush2.msra.mxu0 %v974_v40 }
 0x17d   : > { %1869 = vmatpush2.msra.mxu1 %v1230_v42  ;;  %1799 = vmatprep.subr.mxu0 %v967_v39 }
 0x17e   : > { %1870 = vmatprep.subr.mxu1 %v1223_v14  ;;  %1800 = vmatpush2.msra.mxu0 %v966_v50 }
 0x17f   : > { %1871 = vmatpush2.msra.mxu1 %v1222_v43  ;;  %1801 = vmatprep.subr.mxu0 %v959_v11 }
 0x180   : > { %1872 = vmatprep.subr.mxu1 %v1215_v27  ;;  %1802 = vmatpush2.msra.mxu0 %v958_v48 }
 0x181   : > { %1873 = vmatpush2.msra.mxu1 %v1214_v28  ;;  %1803 = vmatprep.subr.mxu0 %v951_v60 }
 0x182   : > { %1874 = vmatprep.subr.mxu1 %v1207_v49  ;;  %1804 = vmatpush2.msra.mxu0 %v950_v47 }
 0x183   : > { %1875 = vmatpush2.msra.mxu1 %v1206_v26  ;;  %1805 = vmatprep.subr.mxu0 %v943_v16 }
 0x184   : > { %1876 = vmatprep.subr.mxu1 %v1199_v57  ;;  %1806 = vmatpush2.msra.mxu0 %v942_v18  ;;  %v1387_v55 = vpop.f32.mrf.mxu0 }
 0x185   : > { %1877 = vmatpush2.msra.mxu1 %v1198_v63  ;;  %1807 = vmatprep.subr.mxu0 %v935_v32 }
 0x186   : > { %1878 = vmatprep.subr.mxu1 %v1191_v33  ;;  %1808 = vmatpush2.msra.mxu0 %v934_v59  ;;  %v1458_v12 = vpop.f32.mrf.mxu1  ;;  %v1389_v36 = vpop.f32.mrf.mxu0 }
 0x187   : > { %1879 = vmatpush2.msra.mxu1 %v1190_v54  ;;  %1809 = vmatprep.subr.mxu0 %v927_v31  ;;  %v3288_v19 = vadd.f32 %v1458_v12, %v1387_v55 }
 0x188   : > { %1880 = vmatprep.subr.mxu1 %v1183_v2  ;;  %1810 = vmatpush2.msra.mxu0 %v926_v45  ;;  %v1460_v35 = vpop.f32.mrf.mxu1 }
 0x189   : > { %1811 = vmatprep.mubr.f32.mxu0 %v3075_v1  ;;  %1881 = vmatpush2.msra.mxu1 %v1182_v3  ;;  %v3292_v15 = vadd.f32 %v1460_v35, %v1389_v36 }
 0x18a   : > { %1882 = vmatprep.mubr.f32.mxu1 %v3079_v21  ;;  %1812 = vmatmul.mubr.f32.vlgmr.msra.gmra.mxu0 %v3082_v62 }
 0x18b   : > { %1883 = vmatmul.mubr.f32.vlgmr.msra.gmra.mxu1 %v3092_v61 }
 0x1c6   : > { %v1529_v51 = vpop.f32.mrf.mxu0 }
 0x1c7   : > { %v1600_v24 = vpop.f32.mrf.mxu1 }
 0x1c8   : > { %v3296_v56 = vadd.f32 %v1600_v24, %v1529_v51  ;;  %v1531_v4 = vpop.f32.mrf.mxu0 }
 0x1c9   : > { %v1602_v5 = vpop.f32.mrf.mxu1 }
 0x1ca   : > { %v3298_v20 = vadd.f32 %v1602_v5, %v1531_v4 }
 0x208   : > { %v1671_v8 = vpop.f32.mrf.mxu0 }
 0x209   : > { %v1742_v1 = vpop.f32.mrf.mxu1 }
 0x20a   : > { %v3300_v22 = vadd.f32 %v1742_v1, %v1671_v8  ;;  %v1673_v13 = vpop.f32.mrf.mxu0 }
 0x20b   : > { %v1744_v21 = vpop.f32.mrf.mxu1 }
 0x20c   : > { %v3302_v30 = vadd.f32 %v1744_v21, %v1673_v13 }
 0x24a   : > { %v1813_v23 = vpop.f32.mrf.mxu0  ;;  %1892 = sbr.rel (%p2160_p3) target bundleno = 611 (0x263), region = 67 }
 0x24b   : > { %v1884_v62 = vpop.f32.mrf.mxu1 }
 0x24c   : > { %v3304_v34 = vadd.f32 %v1884_v62, %v1813_v23  ;;  %v1815_v61 = vpop.f32.mrf.mxu0 }
 0x24d   : > { %v1886_v58 = vpop.f32.mrf.mxu1 }
 0x24e   : > { %v3306_v38 = vadd.f32 %v1886_v58, %v1815_v61 }
 0x24f   : > { %v1895_v44 = vlaneseq  ;;  %v2383_v37 = vmov 1983009808   ;;  %v1893_v40 = vld [vmem:[#allocation6] sm:$0xff] }
 0x250   : > { %v1954_v9 = vunpack.c.l.s4 %v2383_v37 }
 0x251   : > { %v1896_v0 = vshrl.u32 %v1895_v44, 7 }
 0x252   : > { %v1955_v42 = vunpack.c.0.s8 %v1954_v9 }
 0x253   : > { %v1897_v41 = vsub.s32 0, %v1896_v0  ;;  %v1901_v53 = vsub.s32 1, %v1896_v0  ;;  %v1905_v39 = vsub.s32 2, %v1896_v0  ;;  %v1909_v14 = vsub.s32 3, %v1896_v0 }
 0x254   : > { %v1958_v50 = vsub.s32 %v1955_v42, %v1896_v0  ;;  %v1913_v43 = vsub.s32 4, %v1896_v0  ;;  %v1917_v25 = vsub.s32 5, %v1896_v0  ;;  %v1921_v10 = vsub.s32 6, %v1896_v0 }
 0x255   : > { %v1898_v11 = vrot.slane %v1893_v40, %v1897_v41  ;;  %v1902_v27 = vrot.slane %v1893_v40, %v1901_v53  ;;  %v1906_v48 = vrot.slane %v1893_v40, %v1905_v39  ;;  %v1910_v28 = vrot.slane %v1893_v40, %v1909_v14 }
 0x256   : > { %v1914_v29 = vrot.slane %v1893_v40, %v1913_v43  ;;  %v1918_v46 = vrot.slane %v1893_v40, %v1917_v25  ;;  %v1922_v60 = vrot.slane %v1893_v40, %v1921_v10  ;;  %v1925_v49 = vsub.s32 7, %v1896_v0 }
 0x257   : > { %v1935_v47 = vadd.f32 %v1898_v11, %v3288_v19  ;;  %v1936_v26 = vadd.f32 %v1902_v27, %v3292_v15  ;;  %v1937_v52 = vadd.f32 %v1906_v48, %v3296_v56  ;;  %v1938_v6 = vadd.f32 %v1910_v28, %v3298_v20 }
 0x258   : > { %v1926_v16 = vrot.slane %v1893_v40, %v1925_v49  ;;  %v1939_v57 = vadd.f32 %v1914_v29, %v3300_v22  ;;  %v1940_v18 = vadd.f32 %v1918_v46, %v3302_v30  ;;  %v1941_v63 = vadd.f32 %v1922_v60, %v3304_v34 }
 0x259   : > { %v1951_v7 = vcombine.low %v1935_v47, %v1936_v26  ;;  %v1952_v17 = vcombine.low %v1937_v52, %v1938_v6 }
 0x25a   : > { %v1942_v32 = vadd.f32 %v1926_v16, %v3306_v38  ;;  %v1968_v33 = vcombine.low %v1939_v57, %v1940_v18 }
 0x25b   : > { %v1959_v59 = vrot.slane %v1951_v7, %v1958_v50  ;;  %v1966_v54 = vrot.slane %v1952_v17, %v1958_v50 }
 0x25c   : > { %v1969_v31 = vcombine.low %v1941_v63, %v1942_v32  ;;  %v1976_v2 = vrot.slane %v1968_v33, %v1958_v50 }
 0x25d   : > { %v1967_v45 = vcombine.low %v1959_v59, %v1966_v54 }
 0x25e   : > { %v1983_v55 = vrot.slane %v1969_v31, %v1958_v50 }
 0x25f   : > { %1987 = vst [vmem:[#allocation8] sm:$0xff] %v1967_v45 }
 0x260   : > { %v1984_v3 = vcombine.low %v1976_v2, %v1983_v55 }
 0x262   : > { %1988 = vst [vmem:[#allocation8 + $0x8] sm:$0xff] %v1984_v3 }
 0x263 PF: > { %p2161_p5 = scmp.le.s32.totalorder %s2369_s15, 0 }
 0x265   : > { %1992 = sbr.rel (%p2161_p5) target bundleno = 632 (0x278), region = 71 }
 0x26a   : > { %v2008_v12 = vlaneseq  ;;  %v2384_v36 = vmov 1983009808   ;;  %v2003_v51 = vcombine.low %v3288_v19, %v3292_v15  ;;  %v2004_v4 = vcombine.low %v3296_v56, %v3298_v20  ;;  %v1993_v58 = vld [vmem:[#allocation8] sm:$0xff]  ;;  %v1994_v44 = vld [vmem:[#allocation8 + $0x8] sm:$0xff] }
 0x26b   : > { %v2006_v35 = vunpack.c.l.s4 %v2384_v36  ;;  %v2020_v8 = vcombine.low %v3300_v22, %v3302_v30  ;;  %v2021_v1 = vcombine.low %v3304_v34, %v3306_v38 }
 0x26c   : > { %v2009_v24 = vshrl.u32 %v2008_v12, 7 }
 0x26d   : > { %v2007_v5 = vunpack.c.0.s8 %v2006_v35 }
 0x26f   : > { %v2010_v13 = vsub.s32 %v2007_v5, %v2009_v24 }
 0x271   : > { %v2011_v21 = vrot.slane %v2003_v51, %v2010_v13  ;;  %v2018_v23 = vrot.slane %v2004_v4, %v2010_v13  ;;  %v2028_v62 = vrot.slane %v2020_v8, %v2010_v13  ;;  %v2035_v61 = vrot.slane %v2021_v1, %v2010_v13 }
 0x273   : > { %v2019_v37 = vcombine.low %v2011_v21, %v2018_v23  ;;  %v2036_v19 = vcombine.low %v2028_v62, %v2035_v61 }
 0x275   : > { %v2039_v15 = vadd.f32 %v2019_v37, %v1993_v58  ;;  %v2040_v9 = vadd.f32 %v2036_v19, %v1994_v44 }
 0x277   : > { %2041 = vst [vmem:[#allocation8] sm:$0xff] %v2039_v15  ;;  %2042 = vst [vmem:[#allocation8 + $0x8] sm:$0xff] %v2040_v9 }
 0x278 PF: > { %p3328_p10 = scmp.eq.s32.totalorder %s2147_s18, 3  ;;  %s2385_s21 = smov [#allocation8]  }
 0x279   : > { %s2053_s23 = sshll.u32 %s2385_s21, 4  ;;  %s2054_s23 = int_to_ptr.vmem [resolvable:$true] %s2053_s23 }
 0x27a   : > { %s2295_s24 = scalar_lea.vmem %s2054_s23, 256  ;;  %p2302_p8 = scmp.lt.s32.totalorder %s2054_s23, %s2054_s23 }
 0x27b   : > { %p2296_p6 = scmp.ne.s32.totalorder %s2054_s23, %s2295_s24  ;;  %p2303_p11 = scmp.lt.s32.totalorder %s2295_s24, %s2295_s24 }
 0x27d   : > { %p2297_p7 = pnand %p2296_p6, %p3328_p10  ;;  %p2304_p12 = por %p2303_p11, %p2302_p8 }
 0x27f   : > { %p2298_p9 = pneg %p2297_p7 }
 0x281   : > { %p2305_p13 = pnand %p2304_p12, %p2298_p9 }
 0x283   : > { %2308 = shalt.err (!%p2305_p13)
}
 0x284   : > { %2178 = dma.vmem_to_hbm [thread:$0]  (%p3328_p10), %s2054_s23, 256, %s3364_s3, [#allocation5]  }
 0x285   : > { %2352 = dma.done.wait (%p3328_p10), [#allocation5], 256  }
 0x286   : > { %2354 = vsyncadd (%p3328_p10), [#allocation5], 4294967040 }
 0x287 PF: > { %s18_s17 = sadd.s32 1, %s2377_s17   ;;  %s3410_s12 = smov %s2361_s13 }
 0x288   : > { %p15_p0 = scmp.ge.s32.totalorder %s18_s17, 6   ;;  %s3411_s13 = smov %s2365_s14 }
 0x289   : > { %s3412_s14 = smov %s2464_s25  ;;  %s3413_s15 = smov %s2373_s16 }
 0x28a   : > { %s3414_s16 = smov %s3416_s19  ;;  %17 = sbr.rel (!%p15_p0) target bundleno = 6 (0x6), region = 114 }
 0x28f   :  { %2066 = vsyncpa [#allocation4], 1 }
 0x290   :  { %2068 = vsyncpa [#allocation4 + $0x1], 1 }
 0x291   :  { %2069 = vsyncpa [#allocation7], 1 }
 0x292   :  { %2070 = vsyncpa [#allocation5], 1 }
 0x293   :  { %2072 = vsyncpa [#allocation5 + $0x1], 1 }

</bundles_post_ra>
